<compile_context>
chip_gen: v7x
topology: tpu7x:2x2x1
jax: 0.10.0
libtpu: 0.0.40
codegen_flags: <defaults>
</compile_context>

<pallas_src>
import numpy as np

import jax
import jax.numpy as jnp
from jax.experimental import pallas as pl
from jax.experimental.pallas import tpu as pltpu


# -----------------------------------------------------------------------------
# Pallas kernel (TB batch elements per grid step)
# -----------------------------------------------------------------------------
def _graph_nonlocal_kernel(x_ref, w_tpg_ref, b_tpg_ref, negmask_ref,
                           w_out_ref, b_out_ref, o_ref):
    TB, J, C = x_ref.shape
    _, Js, _, Ci = negmask_ref.shape

    x = x_ref[...]                         # (TB, J, C), original joint order
    x2 = x.reshape(TB * J, C)              # flatten rows for the MXU (M = TB*J)

    # Fused theta/phi/g 1x1-conv projection: one (TB*J, C) x (C, 3*Ci) matmul.
    tpg = jnp.dot(x2, w_tpg_ref[...],
                  preferred_element_type=jnp.float32) + b_tpg_ref[...]
    tpg3 = tpg.reshape(TB, J, 3 * Ci)
    theta = tpg3[:, :, 0:Ci]               # (TB, J, Ci)
    phi = tpg3[:, :, Ci:2 * Ci]
    g = tpg3[:, :, 2 * Ci:3 * Ci]

    # Sub-sample max-pool in grouped order, with the joint permutation folded
    # into a static additive mask: pooled[b, s] = max_{j in group s} proj[b, j].
    neg = negmask_ref[...]                 # (1, Js, J, Ci): 0 in-group, -1e30 out
    phi_p = jnp.max(phi[:, None, :, :] + neg, axis=2)   # (TB, Js, Ci)
    g_p = jnp.max(g[:, None, :, :] + neg, axis=2)       # (TB, Js, Ci)

    # Attention over the Js pooled positions (batched per element).
    f = jnp.einsum("bjc,bsc->bjs", theta, phi_p,
                   preferred_element_type=jnp.float32)  # (TB, J, Js)
    f = f - jnp.max(f, axis=-1, keepdims=True)
    e = jnp.exp(f)
    p = e / jnp.sum(e, axis=-1, keepdims=True)
    y = jnp.einsum("bjs,bsc->bjc", p, g_p,
                   preferred_element_type=jnp.float32)  # (TB, J, Ci)

    # W projection (BatchNorm folded in) + residual with the unpermuted input
    # (the restored_order scatter cancels the grouped_order gather here).
    y2 = y.reshape(TB * J, Ci)
    wy = jnp.dot(y2, w_out_ref[...],
                 preferred_element_type=jnp.float32) + b_out_ref[...]
    o_ref[...] = (wy + x2).reshape(TB, J, C)


# -----------------------------------------------------------------------------
# Wrapper: operand fusion / permutation folding / pallas_call plumbing
# -----------------------------------------------------------------------------
def graph_nonlocal_forward(x, params, grouped_order, restored_order, group_size,
                           block_batch=None):
    B, J, C = x.shape
    Ci = params["w_theta"].shape[0]
    assert J % group_size == 0
    Js = J // group_size

    go = np.asarray(grouped_order)
    ro = np.asarray(restored_order)
    # The analytic gather/scatter cancellation below requires ro == argsort(go),
    # which is exactly how the PyTorch module builds restored_order.
    assert np.all(go[ro] == np.arange(J))

    # --- grid-invariant operand fusion (done once, outside the kernel) --------
    # Pre-transposed fused theta/phi/g weight: (C, 3*Ci), bias (1, 3*Ci).
    w_tpg = jnp.concatenate(
        [params["w_theta"].T, params["w_phi"].T, params["w_g"].T], axis=1)
    b_tpg = jnp.concatenate(
        [params["b_theta"], params["b_phi"], params["b_g"]], axis=1)
    # W projection with eval-mode BatchNorm folded in: (Ci, C), (1, C).
    w_out = params["w_w"].T * params["bn_scale"]
    b_out = params["b_w"] * params["bn_scale"] + params["bn_shift"]

    # Static group-membership mask encoding the grouped_order permutation for
    # the sub-sample max-pool: 0 where joint j belongs to group s, else -1e30.
    negmask_np = np.full((1, Js, J, Ci), -1e30, dtype=np.float32)
    for s in range(Js):
        members = go[s * group_size:(s + 1) * group_size]
        negmask_np[0, s, members, :] = 0.0
    negmask = jnp.asarray(negmask_np)

    # --- batch tiling ----------------------------------------------------------
    if block_batch is None:
        # Keep the x block comfortably small for double-buffered VMEM on every
        # generation (incl. v7x's 64 MiB), and keep >= 2 grid steps when possible
        # so v7x megacore can split the batch.
        cap = max(1, (4 << 20) // (J * C * 4))
        cap = min(cap, max(1, B // 2))
        block_batch = max(tb for tb in range(1, cap + 1) if B % tb == 0)
    TB = block_batch
    assert B % TB == 0

    full2d = lambda b: (0, 0)
    out = pl.pallas_call(
        _graph_nonlocal_kernel,
        out_shape=jax.ShapeDtypeStruct((B, J, C), jnp.float32),
        grid=(B // TB,),
        in_specs=[
            pl.BlockSpec((TB, J, C), lambda b: (b, 0, 0)),        # x (original order)
            pl.BlockSpec((C, 3 * Ci), full2d),                    # fused theta/phi/g W
            pl.BlockSpec((1, 3 * Ci), full2d),                    # fused bias
            pl.BlockSpec((1, Js, J, Ci), lambda b: (0, 0, 0, 0)),  # pooling mask
            pl.BlockSpec((Ci, C), full2d),                        # W_out (BN folded)
            pl.BlockSpec((1, C), full2d),                         # b_out (BN folded)
        ],
        out_specs=pl.BlockSpec((TB, J, C), lambda b: (b, 0, 0)),
        compiler_params=pltpu.CompilerParams(
            dimension_semantics=("parallel",)),
    )(x, w_tpg, b_tpg, negmask, w_out, b_out)

    # grouped_order gather and restored_order scatter are fully folded into the
    # kernel math, so no extra HBM passes here.
    return out


# -----------------------------------------------------------------------------
# Deterministic parameter init (shapes follow the PyTorch module's __init__)
# -----------------------------------------------------------------------------
def init_params(key, hid_dim):
    inter = max(hid_dim // 2, 1)
    keys = jax.random.split(key, 10)

    def w(k, shape, scale=0.1):
        return (scale * jax.random.normal(k, shape)).astype(jnp.float32)

    gamma = w(keys[8], (hid_dim,), 1.0)
    beta = w(keys[9], (hid_dim,), 0.1)
    running_mean = jnp.zeros((hid_dim,), jnp.float32)   # PyTorch BN defaults
    running_var = jnp.ones((hid_dim,), jnp.float32)
    eps = 1e-5
    bn_scale = gamma / jnp.sqrt(running_var + eps)
    bn_shift = beta - running_mean * bn_scale

    return {
        "w_theta": w(keys[0], (inter, hid_dim)),
        "b_theta": w(keys[1], (1, inter)),
        "w_phi": w(keys[2], (inter, hid_dim)),
        "b_phi": w(keys[3], (1, inter)),
        "w_g": w(keys[4], (inter, hid_dim)),
        "b_g": w(keys[5], (1, inter)),
        "w_w": w(keys[6], (hid_dim, inter)),
        "b_w": w(keys[7], (1, hid_dim)),
        "bn_scale": bn_scale.reshape(1, hid_dim),
        "bn_shift": bn_shift.reshape(1, hid_dim),
    }


# -----------------------------------------------------------------------------
# Pure-JAX reference (mirrors the PyTorch NCL code path exactly, incl. the
# explicit grouped_order gather / restored_order scatter)
# -----------------------------------------------------------------------------
def reference_forward(x, params, grouped_order, restored_order, group_size):
    out = jnp.take(x, jnp.asarray(grouped_order), axis=1)     # (B, J, C)
    xt = jnp.transpose(out, (0, 2, 1))                        # (B, C, J)  NCL

    def conv1x1(v, w_, b_):   # v: (B, Cin, J)
        return jnp.einsum("oc,bcj->boj", w_, v) + b_[0][None, :, None]

    theta = conv1x1(xt, params["w_theta"], params["b_theta"])
    phi = conv1x1(xt, params["w_phi"], params["b_phi"])
    g = conv1x1(xt, params["w_g"], params["b_g"])

    def pool(v):   # MaxPool1d over L
        B_, Ci_, J_ = v.shape
        return jnp.max(v.reshape(B_, Ci_, J_ // group_size, group_size), axis=-1)

    phi, g = pool(phi), pool(g)
    theta_x = jnp.transpose(theta, (0, 2, 1))                 # (B, J, Ci)
    g_x = jnp.transpose(g, (0, 2, 1))                         # (B, Js, Ci)
    f = jnp.einsum("bjc,bcs->bjs", theta_x, phi)
    p = jax.nn.softmax(f, axis=-1)
    y = jnp.einsum("bjs,bsc->bjc", p, g_x)                    # (B, J, Ci)
    y_t = jnp.transpose(y, (0, 2, 1))                         # (B, Ci, J)
    wy = conv1x1(y_t, params["w_w"], params["b_w"])           # (B, C, J)
    wy = (wy * params["bn_scale"][0][None, :, None]
          + params["bn_shift"][0][None, :, None])
    z = wy + xt
    out = jnp.transpose(z, (0, 2, 1))
    return jnp.take(out, jnp.asarray(restored_order), axis=1)


if __name__ == "__main__":
    # SemGCN-like sizes: 16 joints, hid_dim=128 (module default), group_size=4.
    B, J, hid_dim, group_size = 8, 16, 128, 4

    key = jax.random.PRNGKey(0)
    k_x, k_p, k_perm = jax.random.split(key, 3)

    x = jax.random.normal(k_x, (B, J, hid_dim), dtype=jnp.float32)
    params = init_params(k_p, hid_dim)

    grouped_order = np.array(jax.random.permutation(k_perm, J))
    restored_order = np.argsort(grouped_order)

    out = graph_nonlocal_forward(x, params, grouped_order, restored_order,
                                 group_size)
    out = jax.block_until_ready(out)

    ref = reference_forward(x, params, grouped_order, restored_order, group_size)
    # Tolerance relaxed slightly vs. 1e-5: operand fusion / permutation folding
    # changes f32 accumulation details, math is otherwise identical.
    np.testing.assert_allclose(np.asarray(out), np.asarray(ref),
                               rtol=2e-4, atol=2e-4)

    print("KERNEL_OK")
</pallas_src>

<mosaic_0001>
module attributes {stable_mosaic.version = 11 : i64} {
  func.func @_graph_nonlocal_kernel(%arg0: i32, %arg1: memref<4x16x128xf32, #tpu.memory_space<vmem>>, %arg2: memref<128x192xf32, #tpu.memory_space<vmem>>, %arg3: memref<1x192xf32, #tpu.memory_space<vmem>>, %arg4: memref<1x4x16x64xf32, #tpu.memory_space<vmem>>, %arg5: memref<64x128xf32, #tpu.memory_space<vmem>>, %arg6: memref<1x128xf32, #tpu.memory_space<vmem>>, %arg7: memref<4x16x128xf32, #tpu.memory_space<vmem>>) attributes {dimension_semantics = [#tpu.dimension_semantics<parallel>], iteration_bounds = array<i64: 2>, scalar_prefetch = 0 : i64, scratch_operands = 0 : i64, tpu.core_type = #tpu.core_type<tc>, window_params = [{transform_indices = @transform_0, window_bounds = array<i64: 4, 16, 128>}, {pipeline_mode = #tpu.pipeline_mode<synchronous>, transform_indices = @transform_1, window_bounds = array<i64: 128, 192>}, {pipeline_mode = #tpu.pipeline_mode<synchronous>, transform_indices = @transform_2, window_bounds = array<i64: 1, 192>}, {pipeline_mode = #tpu.pipeline_mode<synchronous>, transform_indices = @transform_3, window_bounds = array<i64: 1, 4, 16, 64>}, {pipeline_mode = #tpu.pipeline_mode<synchronous>, transform_indices = @transform_4, window_bounds = array<i64: 64, 128>}, {pipeline_mode = #tpu.pipeline_mode<synchronous>, transform_indices = @transform_5, window_bounds = array<i64: 1, 128>}, {transform_indices = @transform_6, window_bounds = array<i64: 4, 16, 128>}]} {
    %c0 = arith.constant 0 : index
    %c0_0 = arith.constant 0 : index
    %c0_1 = arith.constant 0 : index
    %0 = vector.load %arg1[%c0, %c0_0, %c0_1] : memref<4x16x128xf32, #tpu.memory_space<vmem>>, vector<4x16x128xf32>
    %1 = vector.shape_cast %0 : vector<4x16x128xf32> to vector<64x128xf32>
    %c0_2 = arith.constant 0 : index
    %c0_3 = arith.constant 0 : index
    %2 = vector.load %arg2[%c0_2, %c0_3] : memref<128x192xf32, #tpu.memory_space<vmem>>, vector<128x192xf32>
    %cst = arith.constant dense<0.000000e+00> : vector<64x192xf32>
    %3 = tpu.matmul %1, %2, %cst {dimension_numbers = #tpu.dot_dimension_numbers<[1], [0], [0], [1], [0, 0, 1, 1], [], []>} : vector<64x128xf32>, vector<128x192xf32>, vector<64x192xf32> -> vector<64x192xf32>
    %c0_4 = arith.constant 0 : index
    %c0_5 = arith.constant 0 : index
    %4 = vector.load %arg3[%c0_4, %c0_5] : memref<1x192xf32, #tpu.memory_space<vmem>>, vector<1x192xf32>
    %5 = vector.broadcast %4 : vector<1x192xf32> to vector<64x192xf32>
    %6 = arith.addf %3, %5 : vector<64x192xf32>
    %7 = vector.shape_cast %6 : vector<64x192xf32> to vector<4x16x192xf32>
    %8 = vector.extract_strided_slice %7 {offsets = [0, 0, 0], sizes = [4, 16, 64], strides = [1, 1, 1]} : vector<4x16x192xf32> to vector<4x16x64xf32>
    %9 = vector.extract_strided_slice %7 {offsets = [0, 0, 64], sizes = [4, 16, 64], strides = [1, 1, 1]} : vector<4x16x192xf32> to vector<4x16x64xf32>
    %10 = vector.extract_strided_slice %7 {offsets = [0, 0, 128], sizes = [4, 16, 64], strides = [1, 1, 1]} : vector<4x16x192xf32> to vector<4x16x64xf32>
    %c0_6 = arith.constant 0 : index
    %c0_7 = arith.constant 0 : index
    %c0_8 = arith.constant 0 : index
    %c0_9 = arith.constant 0 : index
    %11 = vector.load %arg4[%c0_6, %c0_7, %c0_8, %c0_9] : memref<1x4x16x64xf32, #tpu.memory_space<vmem>>, vector<1x4x16x64xf32>
    %12 = vector.shape_cast %9 : vector<4x16x64xf32> to vector<4x1x16x64xf32>
    %13 = vector.broadcast %12 : vector<4x1x16x64xf32> to vector<4x4x16x64xf32>
    %14 = vector.broadcast %11 : vector<1x4x16x64xf32> to vector<4x4x16x64xf32>
    %15 = arith.addf %13, %14 : vector<4x4x16x64xf32>
    %cst_10 = arith.constant dense<0xFF800000> : vector<4x4x64xf32>
    %16 = vector.multi_reduction <maximumf>, %15, %cst_10 [2] : vector<4x4x16x64xf32> to vector<4x4x64xf32>
    %17 = vector.shape_cast %10 : vector<4x16x64xf32> to vector<4x1x16x64xf32>
    %18 = vector.broadcast %17 : vector<4x1x16x64xf32> to vector<4x4x16x64xf32>
    %19 = vector.broadcast %11 : vector<1x4x16x64xf32> to vector<4x4x16x64xf32>
    %20 = arith.addf %18, %19 : vector<4x4x16x64xf32>
    %cst_11 = arith.constant dense<0xFF800000> : vector<4x4x64xf32>
    %21 = vector.multi_reduction <maximumf>, %20, %cst_11 [2] : vector<4x4x16x64xf32> to vector<4x4x64xf32>
    "tpu.trace_start"() <{level = 10 : i32, message = "bjc,bsc->bjs"}> : () -> ()
    %cst_12 = arith.constant dense<0.000000e+00> : vector<4x16x4xf32>
    %22 = tpu.matmul %8, %16, %cst_12 {dimension_numbers = #tpu.dot_dimension_numbers<[2], [2], [1], [1], [0, 0, 0, 1, 1, 1], [0], [0]>} : vector<4x16x64xf32>, vector<4x4x64xf32>, vector<4x16x4xf32> -> vector<4x16x4xf32>
    "tpu.trace_stop"() : () -> ()
    %cst_13 = arith.constant dense<0xFF800000> : vector<4x16xf32>
    %23 = vector.multi_reduction <maximumf>, %22, %cst_13 [2] : vector<4x16x4xf32> to vector<4x16xf32>
    %24 = vector.shape_cast %23 : vector<4x16xf32> to vector<4x16x1xf32>
    %25 = vector.broadcast %24 : vector<4x16x1xf32> to vector<4x16x4xf32>
    %26 = arith.subf %22, %25 : vector<4x16x4xf32>
    %27 = math.exp %26 : vector<4x16x4xf32>
    %cst_14 = arith.constant dense<0.000000e+00> : vector<4x16xf32>
    %28 = vector.multi_reduction <add>, %27, %cst_14 [2] : vector<4x16x4xf32> to vector<4x16xf32>
    %29 = vector.shape_cast %28 : vector<4x16xf32> to vector<4x16x1xf32>
    %30 = vector.broadcast %29 : vector<4x16x1xf32> to vector<4x16x4xf32>
    %31 = arith.divf %27, %30 : vector<4x16x4xf32>
    "tpu.trace_start"() <{level = 10 : i32, message = "bjs,bsc->bjc"}> : () -> ()
    %cst_15 = arith.constant dense<0.000000e+00> : vector<4x16x64xf32>
    %32 = tpu.matmul %31, %21, %cst_15 {dimension_numbers = #tpu.dot_dimension_numbers<[2], [1], [1], [2], [0, 0, 0, 1, 1, 2], [0], [0]>} : vector<4x16x4xf32>, vector<4x4x64xf32>, vector<4x16x64xf32> -> vector<4x16x64xf32>
    "tpu.trace_stop"() : () -> ()
    %33 = vector.shape_cast %32 : vector<4x16x64xf32> to vector<64x64xf32>
    %c0_16 = arith.constant 0 : index
    %c0_17 = arith.constant 0 : index
    %34 = vector.load %arg5[%c0_16, %c0_17] : memref<64x128xf32, #tpu.memory_space<vmem>>, vector<64x128xf32>
    %cst_18 = arith.constant dense<0.000000e+00> : vector<64x128xf32>
    %35 = tpu.matmul %33, %34, %cst_18 {dimension_numbers = #tpu.dot_dimension_numbers<[1], [0], [0], [1], [0, 0, 1, 1], [], []>} : vector<64x64xf32>, vector<64x128xf32>, vector<64x128xf32> -> vector<64x128xf32>
    %c0_19 = arith.constant 0 : index
    %c0_20 = arith.constant 0 : index
    %36 = vector.load %arg6[%c0_19, %c0_20] : memref<1x128xf32, #tpu.memory_space<vmem>>, vector<1x128xf32>
    %37 = vector.broadcast %36 : vector<1x128xf32> to vector<64x128xf32>
    %38 = arith.addf %35, %37 : vector<64x128xf32>
    %39 = arith.addf %38, %1 : vector<64x128xf32>
    %40 = vector.shape_cast %39 : vector<64x128xf32> to vector<4x16x128xf32>
    %c0_21 = arith.constant 0 : index
    %c0_22 = arith.constant 0 : index
    %c0_23 = arith.constant 0 : index
    %41 = vector.load %arg7[%c0_21, %c0_22, %c0_23] : memref<4x16x128xf32, #tpu.memory_space<vmem>>, vector<4x16x128xf32>
    tpu.vector_store %arg7[%c0_21, %c0_22, %c0_23], %40 {strides = array<i32>} : memref<4x16x128xf32, #tpu.memory_space<vmem>>, vector<4x16x128xf32>,
    return
  }
  func.func @transform_0(%arg0: i32) -> (i32, i32, i32) {
    %c0_i32 = arith.constant 0 : i32
    %c0_i32_0 = arith.constant 0 : i32
    %c0_i32_1 = arith.constant 0 : i32
    return %arg0, %c0_i32, %c0_i32_0 : i32, i32, i32
  }
  func.func @transform_1(%arg0: i32) -> (i32, i32) {
    %c0_i32 = arith.constant 0 : i32
    %c0_i32_0 = arith.constant 0 : i32
    %c0_i32_1 = arith.constant 0 : i32
    return %c0_i32, %c0_i32_0 : i32, i32
  }
  func.func @transform_2(%arg0: i32) -> (i32, i32) {
    %c0_i32 = arith.constant 0 : i32
    %c0_i32_0 = arith.constant 0 : i32
    %c0_i32_1 = arith.constant 0 : i32
    return %c0_i32, %c0_i32_0 : i32, i32
  }
  func.func @transform_3(%arg0: i32) -> (i32, i32, i32, i32) {
    %c0_i32 = arith.constant 0 : i32
    %c0_i32_0 = arith.constant 0 : i32
    %c0_i32_1 = arith.constant 0 : i32
    %c0_i32_2 = arith.constant 0 : i32
    %c0_i32_3 = arith.constant 0 : i32
    return %c0_i32, %c0_i32_0, %c0_i32_1, %c0_i32_2 : i32, i32, i32, i32
  }
  func.func @transform_4(%arg0: i32) -> (i32, i32) {
    %c0_i32 = arith.constant 0 : i32
    %c0_i32_0 = arith.constant 0 : i32
    %c0_i32_1 = arith.constant 0 : i32
    return %c0_i32, %c0_i32_0 : i32, i32
  }
  func.func @transform_5(%arg0: i32) -> (i32, i32) {
    %c0_i32 = arith.constant 0 : i32
    %c0_i32_0 = arith.constant 0 : i32
    %c0_i32_1 = arith.constant 0 : i32
    return %c0_i32, %c0_i32_0 : i32, i32
  }
  func.func @transform_6(%arg0: i32) -> (i32, i32, i32) {
    %c0_i32 = arith.constant 0 : i32
    %c0_i32_0 = arith.constant 0 : i32
    %c0_i32_1 = arith.constant 0 : i32
    return %arg0, %c0_i32, %c0_i32_0 : i32, i32, i32
  }
}

</mosaic_0001>

<bundles_post_ra>
// kernel: tpu_custom_call.1
= control target key start
LH: loop header
LB: loop body
LE: loop exit
PB: predicated region body
PF: predicated region fallthrough
CT: control target
= control target key end

     0   :  { %11 = vsyncpa [#allocation3], 0  ;;  %s3076_s0 = inlined_call_operand.vmem [shape: f32[8,16,128], index: 0, kind: input, shape index: {}]   ;;  %s3077_s1 = inlined_call_operand.vmem [shape: f32[128,192], index: 1, kind: input, shape index: {}]   ;;  %s3078_s2 = inlined_call_operand.vmem [shape: f32[1,192], index: 2, kind: input, shape index: {}]   ;;  %s3079_s3 = inlined_call_operand.vmem [shape: f32[1,4,16,64], index: 3, kind: input, shape index: {}]   ;;  %s3080_s4 = inlined_call_operand.vmem [shape: f32[64,128], index: 4, kind: input, shape index: {}]   ;;  %s3081_s5 = inlined_call_operand.vmem [shape: f32[1,128], index: 5, kind: input, shape index: {}]   ;;  %s3082_s6 = inlined_call_operand.hbm [shape: f32[8,16,128], index: 6, kind: output, shape index: {}]  }
   0x1   :  { %13 = vsyncpa [#allocation3 + $0x1], 0  ;;  %s2266_s21 = smov 0   ;;  %s2268_s22 = smov 0  }
   0x2   :  { %s2270_s23 = smov 0   ;;  %s2272_s24 = smov 0  }
   0x3 LB: > { %s2287_s25 = sadd.s32 4294967295, %s2224_s24   ;;  %s1873_s26 = sadd.s32 4294967294, %s2224_s24   ;;  %s2224_s24 = sphi %s2272_s24, %s3129_s24   ;;  %s2220_s23 = sphi %s2270_s23, %s3128_s23   ;;  %s2216_s22 = sphi %s2268_s22, %s3127_s22   ;;  %s2212_s21 = sphi %s2266_s21, %s3126_s21  }
   0x4   : > { %s2291_s27 = sadd.s32 1, %s2224_s24   ;;  %s157_s28 = sadd.s32 1, %s2220_s23 }
   0x5   : > { %s154_s29 = ssub.s32 %s2224_s24, %s2291_s27  ;;  %p167_p0 = scmp.ne.s32.totalorder %s2220_s23, %s2216_s22 }
   0x6   : > { %p155_p1 = scmp.eq.s32.totalorder %s154_s29, 0  ;;  %p168_p2 = scmp.eq.s32.totalorder %s2287_s25, 1 }
   0x7   : > { %p173_p3 = scmp.ne.s32.totalorder %s2216_s22, %s2212_s21  ;;  %p174_p4 = scmp.eq.s32.totalorder %s1873_s26, 1 }
   0x8   : > { %s2302_s30 = scalar_select %p155_p1, %s2220_s23, %s157_s28  }
   0x9   : > { %p2304_p5 = por %p168_p2, %p167_p0  ;;  %p2308_p6 = por %p174_p4, %p173_p3 }
   0xa   : > { %p1876_p7 = scmp.ge.s32.totalorder %s2224_s24, 1  ;;  %p217_p8 = scmp.lt.s32.totalorder %s2224_s24, 3 }
   0xc   : > { %p218_p9 = pnand %p1876_p7, %p217_p8 }
   0xe   : > { %221 = sbr.rel (%p218_p9) target bundleno = 1453 (0x5ad), region = 44 }
  0x15   : > { %v265_v0 = vld [vmem:[%s3077_s1 + $0x8] sm:$0xff]  ;;  %v267_v1 = vld [vmem:[%s3077_s1 + $0x18] sm:$0xff]  ;;  %v264_v2 = vld [vmem:[%s3077_s1] sm:$0xff]  ;;  %v2226_v7 = vmov 0.0   ;;  %s2227_s12 = smov 64   ;;  %s1878_s13 = sshll.u32 %s2287_s25, 2 }
  0x16   : > { %v2031_v3 = vpack.c.bf16 %v267_v1, %v265_v0  ;;  %v266_v4 = vld [vmem:[%s3077_s1 + $0x10] sm:$0xff]  ;;  %v269_v5 = vld [vmem:[%s3077_s1 + $0x28] sm:$0xff]  ;;  %v271_v6 = vld [vmem:[%s3077_s1 + $0x38] sm:$0xff]  ;;  %372 = vmatprep.mubr.f32.mxu0 %v2226_v7  ;;  %p249_p10 = scmp.lt.s32.totalorder %s1878_s13, 7  ;;  %vm670_vm0 = vcmask 523264   ;;  %vm493_vm1 = vcmask 1048064  }
  0x17   : > { %v2033_v8 = vpack.c.bf16 %v266_v4, %v264_v2  ;;  %v2035_v9 = vpack.c.bf16 %v271_v6, %v269_v5  ;;  %v268_v10 = vld [vmem:[%s3077_s1 + $0x20] sm:$0xff]  ;;  %v270_v11 = vld [vmem:[%s3077_s1 + $0x30] sm:$0xff]  ;;  %v273_v12 = vld [vmem:[%s3077_s1 + $0x48] sm:$0xff]  ;;  %v298_v2 = vlaneseq  ;;  %vm819_vm2 = vcmask 1041409   ;;  %s245_s11 = sand.u32 1, %s2216_s22   ;;  %s1922_s18 = sshll.u32 %s2287_s25, 10 }
  0x18   : > { %2032 = vmatprep.subr.bf16.mxu0 %v2031_v3  ;;  %v275_v13 = vld [vmem:[%s3077_s1 + $0x58] sm:$0xff]  ;;  %v2037_v14 = vpack.c.bf16 %v270_v11, %v268_v10  ;;  %v272_v16 = vld [vmem:[%s3077_s1 + $0x40] sm:$0xff]  ;;  %v274_v17 = vld [vmem:[%s3077_s1 + $0x50] sm:$0xff]  ;;  %s3131_s13 = smov (!%p249_p10, %s1878_s13), 7  ;;  %vm821_vm3 = vcmask 1042434   ;;  %vm823_vm4 = vcmask 1043459   ;;  %s3026_s28 = scalar_lea.hbm %s3082_s6, %s1922_s18 }
  0x19   : > { %2034 = vmatpush1.bf16.msra.mxu0 %v2033_v8  ;;  %v2039_v15 = vpack.c.bf16 %v275_v13, %v273_v12  ;;  %v277_v18 = vld [vmem:[%s3077_s1 + $0x68] sm:$0xff]  ;;  %v279_v19 = vld [vmem:[%s3077_s1 + $0x78] sm:$0xff]  ;;  %v2041_v20 = vpack.c.bf16 %v274_v17, %v272_v16  ;;  %v276_v22 = vld [vmem:[%s3077_s1 + $0x60] sm:$0xff]  ;;  %s1920_s20 = sshll.u32 %s3131_s13, 4  ;;  %v299_v5 = vshrl.u32 %v298_v2, 7  ;;  %vm1288_vm5 = vcmask 1043456  }
  0x1a   : > { %2036 = vmatprep.subr.bf16.mxu0 %v2035_v9  ;;  %v2043_v21 = vpack.c.bf16 %v279_v19, %v277_v18  ;;  %v278_v23 = vld [vmem:[%s3077_s1 + $0x70] sm:$0xff]  ;;  %v281_v24 = vld [vmem:[%s3077_s1 + $0x88] sm:$0xff]  ;;  %v283_v25 = vld [vmem:[%s3077_s1 + $0x98] sm:$0xff]  ;;  %s2471_s29 = scalar_lea.vmem %s3076_s0, %s1920_s20  ;;  %vm1186_vm6 = vcmask 31744   ;;  %s1877_s16 = sshll.u32 %s245_s11, 6 }
  0x1b   : > { %v2045_v26 = vpack.c.bf16 %v278_v23, %v276_v22  ;;  %v280_v27 = vld [vmem:[%s3077_s1 + $0x80] sm:$0xff]  ;;  %v2047_v28 = vpack.c.bf16 %v283_v25, %v281_v24  ;;  %v282_v29 = vld [vmem:[%s3077_s1 + $0x90] sm:$0xff]  ;;  %v285_v32 = vld [vmem:[%s3077_s1 + $0xa8] sm:$0xff]  ;;  %v300_v6 = vsub.s32 0, %v299_v5  ;;  %v304_v10 = vsub.s32 1, %v299_v5  ;;  %s3008_s17 = scalar_lea.vmem [#allocation2], %s1877_s16 }
  0x1c   : > { %v2378_v30 = vld [vmem:[%s3079_s3] sm:$0xff]  ;;  %v2383_v31 = vld [vmem:[%s3079_s3 + $0x10] sm:$0xff]  ;;  %v287_v33 = vld [vmem:[%s3077_s1 + $0xb8] sm:$0xff]  ;;  %v2049_v36 = vpack.c.bf16 %v282_v29, %v280_v27  ;;  %s1811_s19 = sshll.u32 %s3008_s17, 4  ;;  %s3035_s25 = scalar_lea.sflag [#allocation3], %s245_s11  ;;  %s3028_s19 = int_to_ptr.vmem [resolvable:$true] %s1811_s19 }
  0x1d   : > { %2038 = vmatpush1.bf16.msra.mxu0 %v2037_v14  ;;  %437 = vrot.lane.b32.xlu0 %v2378_v30, %s2227_s12  ;;  %v2399_v34 = vld [vmem:[%s3079_s3 + $0x8] sm:$0xff]  ;;  %v2404_v35 = vld [vmem:[%s3079_s3 + $0x18] sm:$0xff]  ;;  %v2051_v37 = vpack.c.bf16 %v287_v33, %v285_v32  ;;  %v284_v38 = vld [vmem:[%s3077_s1 + $0xa0] sm:$0xff]  ;;  %s2162_s13 = scalar_lea.vmem %s3028_s19, 1024  ;;  %s2228_s9 = smov [#allocation2]  }
  0x1e   : > { %2040 = vmatprep.subr.bf16.mxu0 %v2039_v15  ;;  %441 = vrot.lane.b32.xlu1 %v2383_v31, %s2227_s12  ;;  %v286_v39 = vld [vmem:[%s3077_s1 + $0xb0] sm:$0xff]  ;;  %v289_v40 = vld [vmem:[%s3077_s1 + $0xc8] sm:$0xff]  ;;  %v291_v41 = vld [vmem:[%s3077_s1 + $0xd8] sm:$0xff]  ;;  %p2163_p11 = scmp.ne.s32.totalorder %s3028_s19, %s2162_s13 }
  0x1f   : > { %v2425_v42 = vld [vmem:[%s3079_s3 + $0x20] sm:$0xff]  ;;  %v2430_v43 = vld [vmem:[%s3079_s3 + $0x28] sm:$0xff]  ;;  %v2053_v44 = vpack.c.bf16 %v286_v39, %v284_v38  ;;  %v2055_v45 = vpack.c.bf16 %v291_v41, %v289_v40  ;;  %v290_v47 = vld [vmem:[%s3077_s1 + $0xd0] sm:$0xff] }
  0x20   : > { %v288_v46 = vld [vmem:[%s3077_s1 + $0xc0] sm:$0xff]  ;;  %v293_v48 = vld [vmem:[%s3077_s1 + $0xe8] sm:$0xff]  ;;  %v295_v49 = vld [vmem:[%s3077_s1 + $0xf8] sm:$0xff]  ;;  %p2164_p12 = pnand %p2163_p11, %p2304_p5 }
  0x21   : > { %2042 = vmatpush1.bf16.msra.mxu0 %v2041_v20  ;;  %439 = vrot.lane.b32.xlu0 %v2399_v34, %s2227_s12  ;;  %v2451_v50 = vld [vmem:[%s3079_s3 + $0x30] sm:$0xff]  ;;  %v2456_v51 = vld [vmem:[%s3079_s3 + $0x38] sm:$0xff]  ;;  %v2057_v52 = vpack.c.bf16 %v290_v47, %v288_v46  ;;  %v2059_v53 = vpack.c.bf16 %v295_v49, %v293_v48  ;;  %v292_v54 = vld [vmem:[%s3077_s1 + $0xe0] sm:$0xff] }
  0x22   : > { %2044 = vmatprep.subr.bf16.mxu0 %v2043_v21  ;;  %443 = vrot.lane.b32.xlu1 %v2404_v35, %s2227_s12  ;;  %v294_v55 = vld [vmem:[%s3077_s1 + $0xf0] sm:$0xff]  ;;  %v256_v57 = vld [vmem:[%s2471_s29] sm:$0xff]  ;;  %v257_v58 = vld [vmem:[%s2471_s29 + $0x8] sm:$0xff]  ;;  %p2165_p13 = pneg %p2164_p12 }
  0x23   : > { %v2061_v56 = vpack.c.bf16 %v294_v55, %v292_v54  ;;  %v258_v59 = vld [vmem:[%s2471_s29 + $0x10] sm:$0xff]  ;;  %v259_v60 = vld [vmem:[%s2471_s29 + $0x18] sm:$0xff]  ;;  %v260_v61 = vld [vmem:[%s2471_s29 + $0x20] sm:$0xff] }
  0x24   : > { %v261_v62 = vld [vmem:[%s2471_s29 + $0x28] sm:$0xff]  ;;  %v262_v63 = vld [vmem:[%s2471_s29 + $0x30] sm:$0xff]  ;;  %v263_v0 = vld [vmem:[%s2471_s29 + $0x38] sm:$0xff] }
  0x25   : > { %2046 = vmatpush1.bf16.msra.mxu0 %v2045_v26  ;;  %445 = vrot.lane.b32.xlu0 %v2425_v42, %s2227_s12  ;;  %v296_v9 = vld [vmem:[%s3078_s2] sm:$0x3] }
  0x26   : > { %2048 = vmatprep.subr.bf16.mxu0 %v2047_v28  ;;  %447 = vrot.lane.b32.xlu1 %v2430_v43, %s2227_s12  ;;  %v2503_v12 = vrot.slane %v296_v9, %v304_v10 }
  0x29   : > { %2050 = vmatpush1.bf16.msra.mxu0 %v2049_v36  ;;  %449 = vrot.lane.b32.xlu0 %v2451_v50, %s2227_s12 }
  0x2a   : > { %2052 = vmatprep.subr.bf16.mxu0 %v2051_v37  ;;  %451 = vrot.lane.b32.xlu1 %v2456_v51, %s2227_s12 }
  0x2d   : > { %2054 = vmatpush1.bf16.msra.mxu0 %v2053_v44 }
  0x2e   : > { %2056 = vmatprep.subr.bf16.mxu0 %v2055_v45 }
  0x31   : > { %2058 = vmatpush1.bf16.msra.mxu0 %v2057_v52 }
  0x32   : > { %2060 = vmatprep.subr.bf16.mxu0 %v2059_v53 }
  0x35   : > { %2062 = vmatpush1.bf16.msra.mxu0 %v2061_v56 }
  0x38   : > { %373 = vmatmul.mubr.f32.vlgmr.msra.gmra.mrb[0].mxu0 %v256_v57 }
  0x39   : > { %378 = vmatprep.mubr.f32.mxu0 %v2226_v7 }
  0x3c   : > { %379 = vmatmul.mubr.f32.gmra.mrb[2].mxu0 %v257_v58 }
  0x3d   : > { %384 = vmatprep.mubr.f32.mxu0 %v2226_v7 }
  0x40   : > { %385 = vmatmul.mubr.f32.gmra.mrb[4].mxu0 %v258_v59 }
  0x41   : > { %390 = vmatprep.mubr.f32.mxu0 %v2226_v7 }
  0x44   : > { %391 = vmatmul.mubr.f32.gmra.mrb[6].mxu0 %v259_v60 }
  0x45   : > { %396 = vmatprep.mubr.f32.mxu0 %v2226_v7 }
  0x48   : > { %397 = vmatmul.mubr.f32.gmra.mrb[8].mxu0 %v260_v61 }
  0x49   : > { %402 = vmatprep.mubr.f32.mxu0 %v2226_v7 }
  0x4c   : > { %403 = vmatmul.mubr.f32.gmra.mrb[10].mxu0 %v261_v62 }
  0x4d   : > { %408 = vmatprep.mubr.f32.mxu0 %v2226_v7 }
  0x50   : > { %409 = vmatmul.mubr.f32.gmra.mrb[12].mxu0 %v262_v63 }
  0x51   : > { %414 = vmatprep.mubr.f32.mxu0 %v2226_v7  ;;  %v2501_v7 = vrot.slane %v296_v9, %v300_v6 }
  0x54   : > { %415 = vmatmul.mubr.f32.gmra.mrb[14].mxu0 %v263_v0 }
  0x8f   : > { %v2488_v1 = vpop.permute.xlu0 %437 }
  0x90   : > { %v2490_v3 = vpop.permute.xlu1 %441 }
  0x93   : > { %v2492_v4 = vpop.permute.xlu0 %439 }
  0x94   : > { %v2494_v8 = vpop.permute.xlu1 %443 }
  0x97   : > { %v2499_v11 = vpop.permute.xlu0 %445 }
  0x98   : > { %v2505_v14 = vpop.permute.xlu1 %447 }
  0x9b   : > { %v2508_v17 = vpop.permute.xlu0 %449 }
  0x9c   : > { %v2529_v38 = vpop.permute.xlu1 %451 }
 0x10b   : > { %v374_v13 = vpop.f32.mrb[0].mxu0 }
 0x10c   : > { %v375_v15 = vadd.f32 %v374_v13, %v2501_v7  ;;  %v376_v16 = vpop.f32.mrb[1].mxu0 }
 0x10d   : > { %v377_v18 = vadd.f32 %v376_v16, %v2503_v12 }
 0x10e   : > { %v461_v19 = vadd.f32 %v2488_v1, %v375_v15  ;;  %v463_v20 = vadd.f32 %v2490_v3, %v375_v15  ;;  %v465_v21 = vadd.f32 %v2499_v11, %v375_v15  ;;  %1965 = vmatprep.mubr.msk.f32.mxu1 %vm670_vm0, %v375_v15  ;;  %v467_v25 = vadd.f32 %v2508_v17, %v375_v15 }
 0x10f   : > { %v638_v22 = vadd.f32 %v2378_v30, %v377_v18  ;;  %v640_v23 = vadd.f32 %v2383_v31, %v377_v18  ;;  %v642_v24 = vadd.f32 %v2425_v42, %v377_v18  ;;  %v380_v26 = vpop.f32.mrb[2].mxu0  ;;  %v644_v29 = vadd.f32 %v2451_v50, %v377_v18 }
 0x110   : > { %v382_v27 = vpop.f32.mrb[3].mxu0  ;;  %v494_v28 = vsel %vm493_vm1, %v461_v19, -inf  ;;  %v503_v32 = vsel %vm493_vm1, %v463_v20, -inf  ;;  %v2523_v33 = vsel %vm493_vm1, %v465_v21, -inf  ;;  %v2526_v36 = vadd.f32 %v380_v26, %v2501_v7 }
 0x111   : > { %v383_v37 = vadd.f32 %v382_v27, %v2503_v12  ;;  %v671_v39 = vsel %vm670_vm0, %v638_v22, -inf  ;;  %v680_v40 = vsel %vm670_vm0, %v640_v23, -inf  ;;  %v689_v41 = vsel %vm670_vm0, %v642_v24, -inf }
 0x112   : > { %3099 = vst [vmem:[#allocation5_spill] sm:$0xff] %v2526_v36  ;;  %v521_v44 = vsel %vm493_vm1, %v467_v25, -inf  ;;  %v462_v46 = vadd.f32 %v2492_v4, %v2526_v36  ;;  %v464_v47 = vadd.f32 %v2494_v8, %v2526_v36  ;;  %v466_v48 = vadd.f32 %v2505_v14, %v2526_v36 }
 0x113   : > { %v386_v45 = vpop.f32.mrb[4].mxu0  ;;  %v639_v49 = vadd.f32 %v2399_v34, %v383_v37  ;;  %v641_v53 = vadd.f32 %v2404_v35, %v383_v37  ;;  %v643_v54 = vadd.f32 %v2430_v43, %v383_v37  ;;  %v645_v55 = vadd.f32 %v2456_v51, %v383_v37 }
 0x114   : > { %v388_v52 = vpop.f32.mrb[5].mxu0  ;;  %v468_v56 = vadd.f32 %v2529_v38, %v2526_v36  ;;  %v698_v57 = vsel %vm670_vm0, %v644_v29, -inf  ;;  %v495_v58 = vsel %vm493_vm1, %v462_v46, -inf  ;;  %v504_v59 = vsel %vm493_vm1, %v464_v47, -inf }
 0x115   : > { %v672_v60 = vsel %vm670_vm0, %v639_v49, -inf  ;;  %v2551_v61 = vmax.f32 %v494_v28, %v495_v58  ;;  %v2554_v62 = vsel %vm493_vm1, %v466_v48, -inf  ;;  %v681_v0 = vsel %vm670_vm0, %v641_v53, -inf }
 0x116   : > { %v673_v63 = vmax.f32 %v671_v39, %v672_v60  ;;  %v682_v5 = vmax.f32 %v680_v40, %v681_v0  ;;  %v690_v6 = vsel %vm670_vm0, %v643_v54, -inf  ;;  %v699_v9 = vsel %vm670_vm0, %v645_v55, -inf }
 0x117   : > { %v392_v2 = vpop.f32.mrb[6].mxu0  ;;  %v522_v10 = vsel %vm493_vm1, %v468_v56, -inf  ;;  %v691_v16 = vmax.f32 %v689_v41, %v690_v6  ;;  %v2560_v18 = vmax.f32 %v698_v57, %v699_v9  ;;  %v2564_v20 = vmax.f32 %v503_v32, %v504_v59 }
 0x118   : > { %v394_v13 = vpop.f32.mrb[7].mxu0  ;;  %v674_v15 = vrot.slane %v673_v63, 4  ;;  %v2562_v19 = vmax.f32 %v521_v44, %v522_v10  ;;  %v683_v21 = vrot.slane %v682_v5, 4  ;;  %v2567_v22 = vadd.f32 %v386_v45, %v2501_v7 }
 0x119   : > { %3100 = vst [vmem:[#allocation6_spill] sm:$0xff] %v2560_v18  ;;  %v389_v23 = vadd.f32 %v388_v52, %v2503_v12  ;;  %v692_v25 = vrot.slane %v691_v16, 4  ;;  %v2574_v27 = vadd.f32 %v392_v2, %v2501_v7  ;;  %v395_v9 = vadd.f32 %v394_v13, %v2503_v12 }
 0x11a   : > { %3101 = vst [vmem:[#allocation7_spill] sm:$0xff] %v2567_v22  ;;  %v2570_v24 = vmax.f32 %v673_v63, %v674_v15  ;;  %v2576_v29 = vmax.f32 %v682_v5, %v683_v21  ;;  %v469_v32 = vadd.f32 %v2488_v1, %v2567_v22  ;;  %v471_v37 = vadd.f32 %v2490_v3, %v2567_v22 }
 0x11b   : > { %3102 = vst [vmem:[#allocation8_spill] sm:$0xff] %v2574_v27  ;;  %v398_v28 = vpop.f32.mrb[8].mxu0  ;;  %v473_v39 = vadd.f32 %v2499_v11, %v2567_v22  ;;  %v2585_v44 = vmax.f32 %v691_v16, %v692_v25  ;;  %v646_v46 = vadd.f32 %v2378_v30, %v389_v23  ;;  %v2592_v48 = vadd.f32 %v2508_v17, %v2567_v22 }
 0x11c   : > { %v400_v40 = vpop.f32.mrb[9].mxu0  ;;  %v530_v49 = vsel %vm493_vm1, %v469_v32, -inf  ;;  %v539_v52 = vsel %vm493_vm1, %v471_v37, -inf  ;;  %v648_v54 = vadd.f32 %v2383_v31, %v389_v23  ;;  %v650_v55 = vadd.f32 %v2425_v42, %v389_v23 }
 0x11d   : > { %v2597_v53 = vsel %vm493_vm1, %v473_v39, -inf  ;;  %v652_v56 = vadd.f32 %v2451_v50, %v389_v23  ;;  %v707_v58 = vsel %vm670_vm0, %v646_v46, -inf  ;;  %v470_v59 = vadd.f32 %v2492_v4, %v2574_v27 }
 0x11e   : > { %v472_v60 = vadd.f32 %v2494_v8, %v2574_v27  ;;  %v474_v63 = vadd.f32 %v2505_v14, %v2574_v27  ;;  %v716_v2 = vsel %vm670_vm0, %v648_v54, -inf  ;;  %v725_v5 = vsel %vm670_vm0, %v650_v55, -inf }
 0x11f   : > { %v404_v57 = vpop.f32.mrb[10].mxu0  ;;  %v2613_v6 = vadd.f32 %v2529_v38, %v2574_v27  ;;  %v734_v10 = vsel %vm670_vm0, %v652_v56, -inf  ;;  %v531_v15 = vsel %vm493_vm1, %v470_v59, -inf  ;;  %v2620_v21 = vadd.f32 %v398_v28, %v2501_v7 }
 0x120   : > { %v406_v0 = vpop.f32.mrb[11].mxu0  ;;  %v540_v16 = vsel %vm493_vm1, %v472_v60, -inf  ;;  %v2622_v23 = vmax.f32 %v530_v49, %v531_v15  ;;  %v2625_v25 = vsel %vm493_vm1, %v474_v63, -inf  ;;  %v647_v32 = vadd.f32 %v2399_v34, %v395_v9 }
 0x121   : > { %3103 = vst [vmem:[#allocation9_spill] sm:$0xff] %v2620_v21  ;;  %v649_v37 = vadd.f32 %v2404_v35, %v395_v9  ;;  %v651_v13 = vadd.f32 %v2430_v43, %v395_v9  ;;  %v653_v46 = vadd.f32 %v2456_v51, %v395_v9  ;;  %v477_v54 = vadd.f32 %v2488_v1, %v2620_v21 }
 0x122   : > { %v479_v28 = vadd.f32 %v2490_v3, %v2620_v21  ;;  %v2635_v55 = vmax.f32 %v539_v52, %v540_v16  ;;  %v708_v56 = vsel %vm670_vm0, %v647_v32, -inf  ;;  %v481_v60 = vadd.f32 %v2499_v11, %v2620_v21 }
 0x123   : > { %v410_v39 = vpop.f32.mrb[12].mxu0  ;;  %v717_v59 = vsel %vm670_vm0, %v649_v37, -inf  ;;  %v709_v63 = vmax.f32 %v707_v58, %v708_v56  ;;  %v726_v9 = vsel %vm670_vm0, %v651_v13, -inf  ;;  %v735_v26 = vsel %vm670_vm0, %v653_v46, -inf }
 0x124   : > { %v412_v49 = vpop.f32.mrb[13].mxu0  ;;  %v718_v15 = vmax.f32 %v716_v2, %v717_v59  ;;  %v727_v47 = vmax.f32 %v725_v5, %v726_v9  ;;  %v2643_v41 = vmax.f32 %v734_v10, %v735_v26  ;;  %v2647_v52 = vadd.f32 %v2508_v17, %v2620_v21 }
 0x125   : > { %v566_v16 = vsel %vm493_vm1, %v477_v54, -inf  ;;  %v710_v37 = vrot.slane %v709_v63, 4  ;;  %v575_v58 = vsel %vm493_vm1, %v479_v28, -inf  ;;  %v401_v2 = vadd.f32 %v400_v40, %v2503_v12 }
 0x126   : > { %3104 = vst [vmem:[#allocation10_spill] sm:$0xff] %v2643_v41  ;;  %v719_v45 = vrot.slane %v718_v15, 4  ;;  %v728_v46 = vrot.slane %v727_v47, 4  ;;  %v2657_v26 = vsel %vm493_vm1, %v481_v60, -inf  ;;  %v2660_v5 = vadd.f32 %v404_v57, %v2501_v7 }
 0x127   : > { %v2650_v32 = vpop.f32.mrb[14].mxu0  ;;  %v407_v10 = vadd.f32 %v406_v0, %v2503_v12  ;;  %v2663_v54 = vmax.f32 %v709_v63, %v710_v37  ;;  %v654_v59 = vadd.f32 %v2378_v30, %v401_v2  ;;  %v656_v28 = vadd.f32 %v2383_v31, %v401_v2 }
 0x128   : > { %v2654_v13 = vpop.f32.mrb[15].mxu0  ;;  %3105 = vst [vmem:[#allocation11_spill] sm:$0xff] %v2660_v5  ;;  %v2665_v56 = vmax.f32 %v718_v15, %v719_v45  ;;  %v658_v9 = vadd.f32 %v2425_v42, %v401_v2  ;;  %v660_v60 = vadd.f32 %v2451_v50, %v401_v2  ;;  %v478_v57 = vadd.f32 %v2492_v4, %v2660_v5 }
 0x129   : > { %3106 = vst [vmem:[#allocation12_spill] sm:$0xff] %v2663_v54  ;;  %v2676_v63 = vmax.f32 %v727_v47, %v728_v46  ;;  %v743_v45 = vsel %vm670_vm0, %v654_v59, -inf  ;;  %v752_v15 = vsel %vm670_vm0, %v656_v28, -inf  ;;  %v480_v40 = vadd.f32 %v2494_v8, %v2660_v5 }
 0x12a   : > { %3107 = vst [vmem:[#allocation13_spill] sm:$0xff] %v2665_v56  ;;  %v761_v37 = vsel %vm670_vm0, %v658_v9, -inf  ;;  %v482_v2 = vadd.f32 %v2505_v14, %v2660_v5  ;;  %v770_v27 = vsel %vm670_vm0, %v660_v60, -inf  ;;  %v567_v21 = vsel %vm493_vm1, %v478_v57, -inf }
 0x12b   : > { %3108 = vst [vmem:[#allocation14_spill] sm:$0xff] %v2676_v63  ;;  %v655_v0 = vadd.f32 %v2399_v34, %v407_v10  ;;  %v657_v47 = vadd.f32 %v2404_v35, %v407_v10  ;;  %v2691_v46 = vadd.f32 %v2529_v38, %v2660_v5  ;;  %v2693_v59 = vmax.f32 %v566_v16, %v567_v21 }
 0x12c   : > { %v576_v28 = vsel %vm493_vm1, %v480_v40, -inf  ;;  %v659_v9 = vadd.f32 %v2430_v43, %v407_v10  ;;  %v2698_v22 = vsel %vm493_vm1, %v482_v2, -inf  ;;  %v661_v60 = vadd.f32 %v2456_v51, %v407_v10 }
 0x12d   : > { %v744_v57 = vsel %vm670_vm0, %v655_v0, -inf  ;;  %v753_v36 = vsel %vm670_vm0, %v657_v47, -inf  ;;  %v2705_v21 = vadd.f32 %v410_v39, %v2501_v7  ;;  %v2707_v16 = vmax.f32 %v575_v58, %v576_v28 }
 0x12e   : > { %v745_v41 = vmax.f32 %v743_v45, %v744_v57  ;;  %v754_v63 = vmax.f32 %v752_v15, %v753_v36  ;;  %v762_v5 = vsel %vm670_vm0, %v659_v9, -inf  ;;  %v771_v56 = vsel %vm670_vm0, %v661_v60, -inf }
 0x12f   : > { %v763_v40 = vmax.f32 %v761_v37, %v762_v5  ;;  %v413_v2 = vadd.f32 %v412_v49, %v2503_v12  ;;  %v2711_v18 = vmax.f32 %v770_v27, %v771_v56  ;;  %v485_v0 = vadd.f32 %v2488_v1, %v2705_v21 }
 0x130   : > { %v746_v54 = vrot.slane %v745_v41, 4  ;;  %v755_v10 = vrot.slane %v754_v63, 4  ;;  %v487_v45 = vadd.f32 %v2490_v3, %v2705_v21  ;;  %v489_v39 = vadd.f32 %v2499_v11, %v2705_v21 }
 0x131   : > { %v764_v36 = vrot.slane %v763_v40, 4  ;;  %v497_v58 = vrot.slane %v2551_v61, 4  ;;  %v773_v49 = vrot.slane %v2711_v18, 4  ;;  %v2727_v27 = vadd.f32 %v2508_v17, %v2705_v21 }
 0x132   : > { %v2720_v5 = vmax.f32 %v745_v41, %v746_v54  ;;  %v2722_v15 = vmax.f32 %v754_v63, %v755_v10  ;;  %v602_v56 = vsel %vm493_vm1, %v485_v0, -inf  ;;  %v611_v3 = vsel %vm493_vm1, %v487_v45, -inf }
 0x133   : > { %v2729_v1 = vmax.f32 %v763_v40, %v764_v36  ;;  %v662_v11 = vadd.f32 %v2378_v30, %v413_v2  ;;  %v2736_v41 = vsel %vm493_vm1, %v489_v39, -inf  ;;  %v664_v54 = vadd.f32 %v2383_v31, %v413_v2 }
 0x134   : > { %v748_v37 = vrot.slane %v2720_v5, 2  ;;  %v666_v63 = vadd.f32 %v2425_v42, %v413_v2  ;;  %v757_v17 = vrot.slane %v2722_v15, 2  ;;  %v668_v47 = vadd.f32 %v2451_v50, %v413_v2 }
 0x135   : > { %v498_v28 = vmax.f32 %v2551_v61, %v497_v58  ;;  %v506_v9 = vrot.slane %v2564_v20, 4  ;;  %v779_v60 = vsel %vm670_vm0, %v662_v11, -inf  ;;  %v788_v30 = vsel %vm670_vm0, %v664_v54, -inf }
 0x136   : > { %v514_v57 = vmax.f32 %v2523_v33, %v2554_v62  ;;  %v3109_v40 = vrot.slane %v2562_v19, 4  ;;  %v797_v42 = vsel %vm670_vm0, %v666_v63, -inf  ;;  %v2755_v61 = vadd.f32 %v2650_v32, %v2501_v7 }
 0x137   : > { %v499_v10 = vrot.slane %v498_v28, 2  ;;  %v507_v50 = vmax.f32 %v2564_v20, %v506_v9  ;;  %v806_v2 = vsel %vm670_vm0, %v668_v47, -inf  ;;  %v419_v33 = vadd.f32 %v2654_v13, %v2503_v12 }
 0x138   : > { %v525_v31 = vmax.f32 %v2562_v19, %v3109_v40  ;;  %v515_v0 = vrot.slane %v514_v57, 4  ;;  %v486_v19 = vadd.f32 %v2492_v4, %v2755_v61  ;;  %v488_v20 = vadd.f32 %v2494_v8, %v2755_v61 }
 0x139   : > { %v500_v62 = vmax.f32 %v498_v28, %v499_v10  ;;  %v508_v45 = vrot.slane %v507_v50, 2  ;;  %v490_v7 = vadd.f32 %v2505_v14, %v2755_v61  ;;  %v533_v32 = vrot.slane %v2622_v23, 4 }
 0x13a   : > { %v526_v36 = vrot.slane %v525_v31, 2  ;;  %v516_v39 = vmax.f32 %v514_v57, %v515_v0  ;;  %v603_v12 = vsel %vm493_vm1, %v486_v19, -inf  ;;  %v612_v13 = vsel %vm493_vm1, %v488_v20, -inf }
 0x13b   : > { %v501_v11 = vrot.slane %v500_v62, 1  ;;  %v509_v54 = vmax.f32 %v507_v50, %v508_v45  ;;  %v2771_v4 = vadd.f32 %v2529_v38, %v2755_v61  ;;  %v2773_v8 = vmax.f32 %v602_v56, %v603_v12 }
 0x13c   : > { %v527_v58 = vmax.f32 %v525_v31, %v526_v36  ;;  %v517_v63 = vrot.slane %v516_v39, 2  ;;  %v2775_v57 = vmax.f32 %v611_v3, %v612_v13  ;;  %v663_v14 = vadd.f32 %v2399_v34, %v419_v33 }
 0x13d   : > { %v502_v28 = vmax.f32 %v500_v62, %v501_v11  ;;  %v510_v9 = vrot.slane %v509_v54, 1  ;;  %v665_v10 = vadd.f32 %v2404_v35, %v419_v33  ;;  %v667_v50 = vadd.f32 %v2430_v43, %v419_v33 }
 0x13e   : > { %v528_v47 = vrot.slane %v527_v58, 1  ;;  %v518_v40 = vmax.f32 %v516_v39, %v517_v63  ;;  %v669_v36 = vadd.f32 %v2456_v51, %v419_v33  ;;  %v780_v38 = vsel %vm670_vm0, %v663_v14, -inf }
 0x13f   : > { %v511_v0 = vmax.f32 %v509_v54, %v510_v9  ;;  %v534_v56 = vmax.f32 %v2622_v23, %v533_v32  ;;  %v781_v62 = vmax.f32 %v779_v60, %v780_v38  ;;  %v789_v3 = vsel %vm670_vm0, %v665_v10, -inf }
 0x140   : > { %v529_v31 = vmax.f32 %v527_v58, %v528_v47  ;;  %v519_v45 = vrot.slane %v518_v40, 1  ;;  %v798_v19 = vsel %vm670_vm0, %v667_v50, -inf  ;;  %v790_v20 = vmax.f32 %v788_v30, %v789_v3 }
 0x141   : > { %v820_v34 = vsel %vm819_vm2, %v511_v0, %v502_v28  ;;  %v799_v39 = vmax.f32 %v797_v42, %v798_v19  ;;  %v807_v35 = vsel %vm670_vm0, %v669_v36, -inf  ;;  %v782_v58 = vrot.slane %v781_v62, 4 }
 0x142   : > { %v520_v43 = vmax.f32 %v518_v40, %v519_v45  ;;  %v2787_v11 = vmax.f32 %v806_v2, %v807_v35  ;;  %v535_v51 = vrot.slane %v534_v56, 2  ;;  %v791_v33 = vrot.slane %v790_v20, 4 }
 0x143   : > { %v800_v54 = vrot.slane %v799_v39, 4  ;;  %v542_v23 = vrot.slane %v2635_v55, 4  ;;  %v550_v60 = vmax.f32 %v2597_v53, %v2625_v25  ;;  %v2794_v12 = vsel %vm493_vm1, %v490_v7, -inf }
 0x144   : > { %v822_v32 = vsel %vm821_vm3, %v520_v43, %v820_v34  ;;  %v2796_v30 = vmax.f32 %v781_v62, %v782_v58  ;;  %v536_v42 = vmax.f32 %v534_v56, %v535_v51  ;;  %v2799_v2 = vmax.f32 %v790_v20, %v791_v33 }
 0x145   : > { %v824_v13 = vsel %vm823_vm4, %v529_v31, %v822_v32  ;;  %v809_v63 = vrot.slane %v2787_v11, 4  ;;  %v543_v47 = vmax.f32 %v2635_v55, %v542_v23  ;;  %v2805_v25 = vmax.f32 %v799_v39, %v800_v54 }
 0x146   : > { %825 = vrot.lane.b32.xlu0 %v824_v13, %s2227_s12  ;;  %v784_v53 = vrot.slane %v2796_v30, 2  ;;  %v537_v28 = vrot.slane %v536_v42, 1  ;;  %v551_v7 = vrot.slane %v550_v60, 4  ;;  %v557_v14 = vsel %vm493_vm1, %v2592_v48, -inf }
 0x147   : > { %v544_v9 = vrot.slane %v543_v47, 2  ;;  %v558_v40 = vsel %vm493_vm1, %v2613_v6, -inf  ;;  %v569_v31 = vrot.slane %v2693_v59, 4  ;;  %v578_v0 = vrot.slane %v2707_v16, 4 }
 0x148   : > { %v538_v10 = vmax.f32 %v536_v42, %v537_v28  ;;  %v552_v50 = vmax.f32 %v550_v60, %v551_v7  ;;  %v559_v55 = vmax.f32 %v557_v14, %v558_v40  ;;  %v586_v56 = vmax.f32 %v2657_v26, %v2698_v22 }
 0x149   : > { %v545_v36 = vmax.f32 %v543_v47, %v544_v9  ;;  %v570_v38 = vmax.f32 %v2693_v59, %v569_v31  ;;  %v593_v45 = vsel %vm493_vm1, %v2647_v52, -inf  ;;  %v579_v6 = vmax.f32 %v2707_v16, %v578_v0 }
 0x14a   : > { %v553_v48 = vrot.slane %v552_v50, 2  ;;  %v560_v62 = vrot.slane %v559_v55, 4  ;;  %v594_v3 = vsel %vm493_vm1, %v2691_v46, -inf  ;;  %v587_v20 = vrot.slane %v586_v56, 4 }
 0x14b   : > { %v546_v19 = vrot.slane %v545_v36, 1  ;;  %v571_v34 = vrot.slane %v570_v38, 2  ;;  %v595_v39 = vmax.f32 %v593_v45, %v594_v3  ;;  %v580_v59 = vrot.slane %v579_v6, 2 }
 0x14c   : > { %v554_v35 = vmax.f32 %v552_v50, %v553_v48  ;;  %v561_v43 = vmax.f32 %v559_v55, %v560_v62  ;;  %v605_v58 = vrot.slane %v2773_v8, 4  ;;  %v588_v51 = vmax.f32 %v586_v56, %v587_v20 }
 0x14d   : > { %v547_v22 = vmax.f32 %v545_v36, %v546_v19  ;;  %v572_v26 = vmax.f32 %v570_v38, %v571_v34  ;;  %v596_v52 = vrot.slane %v595_v39, 4  ;;  %v581_v23 = vmax.f32 %v579_v6, %v580_v59 }
 0x14e   : > { %v555_v33 = vrot.slane %v554_v35, 1  ;;  %v562_v54 = vrot.slane %v561_v43, 2  ;;  %v606_v16 = vmax.f32 %v2773_v8, %v605_v58  ;;  %v589_v32 = vrot.slane %v588_v51, 2 }
 0x14f   : > { %v914_v46 = vsel %vm819_vm2, %v547_v22, %v538_v10  ;;  %v573_v60 = vrot.slane %v572_v26, 1  ;;  %v597_v42 = vmax.f32 %v595_v39, %v596_v52  ;;  %v582_v28 = vrot.slane %v581_v23, 1 }
 0x150   : > { %v556_v13 = vmax.f32 %v554_v35, %v555_v33  ;;  %v563_v47 = vmax.f32 %v561_v43, %v562_v54  ;;  %v607_v7 = vrot.slane %v606_v16, 2  ;;  %v590_v14 = vmax.f32 %v588_v51, %v589_v32 }
 0x151   : > { %v574_v9 = vmax.f32 %v572_v26, %v573_v60  ;;  %v598_v40 = vrot.slane %v597_v42, 2  ;;  %v614_v31 = vrot.slane %v2775_v57, 4  ;;  %v583_v0 = vmax.f32 %v581_v23, %v582_v28 }
 0x152   : > { %v564_v50 = vrot.slane %v563_v47, 1  ;;  %v915_v55 = vsel %vm821_vm3, %v556_v13, %v914_v46  ;;  %v608_v36 = vmax.f32 %v606_v16, %v607_v7  ;;  %v591_v8 = vrot.slane %v590_v14, 1 }
 0x153   : > { %v599_v38 = vmax.f32 %v597_v42, %v598_v40  ;;  %v615_v10 = vmax.f32 %v2775_v57, %v614_v31  ;;  %v622_v56 = vmax.f32 %v2736_v41, %v2794_v12  ;;  %v1006_v48 = vsel %vm819_vm2, %v583_v0, %v574_v9  ;;  %v3114_v31 = vld [vmem:[#allocation12_spill] sm:$0xff] }
 0x154   : > { %v565_v45 = vmax.f32 %v563_v47, %v564_v50  ;;  %v609_v62 = vrot.slane %v608_v36, 1  ;;  %v629_v6 = vsel %vm493_vm1, %v2727_v27, -inf  ;;  %v592_v3 = vmax.f32 %v590_v14, %v591_v8 }
 0x155   : > { %v600_v19 = vrot.slane %v599_v38, 1  ;;  %v616_v34 = vrot.slane %v615_v10, 2  ;;  %v623_v20 = vrot.slane %v622_v56, 4  ;;  %v630_v57 = vsel %vm493_vm1, %v2771_v4, -inf }
 0x156   : > { %v916_v39 = vsel %vm823_vm4, %v565_v45, %v915_v55  ;;  %v610_v35 = vmax.f32 %v608_v36, %v609_v62  ;;  %v3110_v43 = vrot.slane %v2570_v24, 2  ;;  %v1007_v59 = vsel %vm821_vm3, %v592_v3, %v1006_v48 }
 0x157   : > { %917 = vrot.lane.b32.xlu1 %v916_v39, %s2227_s12  ;;  %v601_v12 = vmax.f32 %v599_v38, %v600_v19  ;;  %v617_v27 = vmax.f32 %v615_v10, %v616_v34  ;;  %v624_v58 = vmax.f32 %v622_v56, %v623_v20  ;;  %v631_v22 = vmax.f32 %v629_v6, %v630_v57  ;;  %v3116_v38 = vld [vmem:[#allocation13_spill] sm:$0xff]  ;;  %v3118_v34 = vld [vmem:[#allocation14_spill] sm:$0xff] }
 0x158   : > { %v677_v41 = vmax.f32 %v2570_v24, %v3110_v43  ;;  %v3111_v51 = vrot.slane %v2576_v29, 2  ;;  %v694_v33 = vrot.slane %v2585_v44, 2  ;;  %v3112_v24 = vld [vmem:[#allocation6_spill] sm:$0xff]  ;;  %v793_v47 = vrot.slane %v2799_v2, 2 }
 0x159   : > { %v1008_v4 = vsel %vm823_vm4, %v601_v12, %v1007_v59  ;;  %v618_v54 = vrot.slane %v617_v27, 1  ;;  %v625_v23 = vrot.slane %v624_v58, 2  ;;  %v3113_v16 = vrot.slane %v3112_v24, 4 }
 0x15a   : > { %v678_v26 = vrot.slane %v677_v41, 1  ;;  %v686_v52 = vmax.f32 %v2576_v29, %v3111_v51  ;;  %1009 = vrot.lane.b32.xlu0 %v1008_v4, %s2227_s12  ;;  %v632_v60 = vrot.slane %v631_v22, 4  ;;  %v695_v13 = vmax.f32 %v2585_v44, %v694_v33 }
 0x15b   : > { %v702_v46 = vmax.f32 %v3112_v24, %v3113_v16  ;;  %v619_v29 = vmax.f32 %v617_v27, %v618_v54  ;;  %v626_v28 = vmax.f32 %v624_v58, %v625_v23  ;;  %v3115_v50 = vrot.slane %v3114_v31, 2 }
 0x15c   : > { %v679_v32 = vmax.f32 %v677_v41, %v678_v26  ;;  %v687_v42 = vrot.slane %v686_v52, 1  ;;  %v633_v9 = vmax.f32 %v631_v22, %v632_v60  ;;  %v696_v40 = vrot.slane %v695_v13, 1 }
 0x15d   : > { %v703_v7 = vrot.slane %v702_v46, 2  ;;  %v713_v55 = vmax.f32 %v3114_v31, %v3115_v50  ;;  %v627_v0 = vrot.slane %v626_v28, 1  ;;  %v1098_v36 = vsel %vm819_vm2, %v619_v29, %v610_v35  ;;  %v3119_v35 = vld [vmem:[#allocation10_spill] sm:$0xff] }
 0x15e   : > { %v688_v14 = vmax.f32 %v686_v52, %v687_v42  ;;  %v3117_v10 = vrot.slane %v3116_v38, 2  ;;  %v634_v56 = vrot.slane %v633_v9, 2  ;;  %v697_v45 = vmax.f32 %v695_v13, %v696_v40 }
 0x15f   : > { %v704_v8 = vmax.f32 %v702_v46, %v703_v7  ;;  %v714_v62 = vrot.slane %v713_v55, 1  ;;  %v628_v6 = vmax.f32 %v626_v28, %v627_v0  ;;  %v730_v20 = vrot.slane %v3118_v34, 2 }
 0x160   : > { %v722_v44 = vmax.f32 %v3116_v38, %v3117_v10  ;;  %v1279_v48 = vsel %vm819_vm2, %v688_v14, %v679_v32  ;;  %v635_v39 = vmax.f32 %v633_v9, %v634_v56  ;;  %v3120_v41 = vrot.slane %v3119_v35, 4 }
 0x161   : > { %v705_v3 = vrot.slane %v704_v8, 1  ;;  %v1280_v57 = vsel %vm821_vm3, %v697_v45, %v1279_v48  ;;  %v715_v43 = vmax.f32 %v713_v55, %v714_v62  ;;  %v1099_v59 = vsel %vm821_vm3, %v628_v6, %v1098_v36 }
 0x162   : > { %v723_v19 = vrot.slane %v722_v44, 1  ;;  %v738_v12 = vmax.f32 %v3119_v35, %v3120_v41  ;;  %v731_v22 = vmax.f32 %v3118_v34, %v730_v20  ;;  %v636_v26 = vrot.slane %v635_v39, 1  ;;  %v3121_v34 = vld [vmem:[#allocation5_spill] sm:$0xff]  ;;  %v3122_v20 = vld [vmem:[#allocation7_spill] sm:$0xff] }
 0x163   : > { %v706_v27 = vmax.f32 %v704_v8, %v705_v3  ;;  %v749_v52 = vmax.f32 %v2720_v5, %v748_v37  ;;  %v758_v33 = vmax.f32 %v2722_v15, %v757_v17  ;;  %v766_v24 = vrot.slane %v2729_v1, 2  ;;  %v3124_v35 = vld [vmem:[#allocation9_spill] sm:$0xff]  ;;  %v3125_v41 = vld [vmem:[#allocation11_spill] sm:$0xff] }
 0x164   : > { %v724_v58 = vmax.f32 %v722_v44, %v723_v19  ;;  %v739_v51 = vrot.slane %v738_v12, 2  ;;  %v732_v54 = vrot.slane %v731_v22, 1  ;;  %v637_v16 = vmax.f32 %v635_v39, %v636_v26 }
 0x165   : > { %v2873_v4 = vsel %vm823_vm4, %v706_v27, %v1280_v57  ;;  %v750_v60 = vrot.slane %v749_v52, 1  ;;  %v759_v32 = vrot.slane %v758_v33, 1  ;;  %v767_v13 = vmax.f32 %v2729_v1, %v766_v24 }
 0x166   : > { %v1370_v23 = vsel %vm819_vm2, %v724_v58, %v715_v43  ;;  %v740_v46 = vmax.f32 %v738_v12, %v739_v51  ;;  %v733_v42 = vmax.f32 %v731_v22, %v732_v54  ;;  %v774_v5 = vmax.f32 %v2711_v18, %v773_v49  ;;  %v3123_v43 = vld [vmem:[#allocation8_spill] sm:$0xff] }
 0x167   : > { %v785_v15 = vmax.f32 %v2796_v30, %v784_v53  ;;  %v1100_v37 = vsel %vm823_vm4, %v637_v16, %v1099_v59  ;;  %v751_v29 = vmax.f32 %v749_v52, %v750_v60  ;;  %v760_v28 = vmax.f32 %v758_v33, %v759_v32 }
 0x168   : > { %v741_v17 = vrot.slane %v740_v46, 1  ;;  %1101 = vrot.lane.b32.xlu1 %v1100_v37, %s2227_s12  ;;  %v1371_v7 = vsel %vm821_vm3, %v733_v42, %v1370_v23  ;;  %v768_v9 = vrot.slane %v767_v13, 1  ;;  %v775_v14 = vrot.slane %v774_v5, 2  ;;  %s2166_s12 = sshll.u32 %s2228_s9, 4  ;;  %s2167_s12 = int_to_ptr.vmem [resolvable:$false] %s2166_s12 }
 0x169   : > { %v786_v1 = vrot.slane %v785_v15, 1  ;;  %v1460_v31 = vsel %vm819_vm2, %v760_v28, %v751_v29  ;;  %v794_v18 = vmax.f32 %v2799_v2, %v793_v47  ;;  %v802_v49 = vrot.slane %v2805_v25, 2  ;;  %s2168_s10 = scalar_lea.vmem %s2167_s12, 2048  ;;  %p2169_p0 = scmp.lt.s32.totalorder %s3028_s19, %s2167_s12 }
 0x16a   : > { %v742_v40 = vmax.f32 %v740_v46, %v741_v17  ;;  %v769_v30 = vmax.f32 %v767_v13, %v768_v9  ;;  %v776_v53 = vmax.f32 %v774_v5, %v775_v14  ;;  %v810_v50 = vmax.f32 %v2787_v11, %v809_v63  ;;  %p2170_p1 = scmp.lt.s32.totalorder %s2168_s10, %s2162_s13 }
 0x16b   : > { %v787_v0 = vmax.f32 %v785_v15, %v786_v1  ;;  %v795_v36 = vrot.slane %v794_v18, 1  ;;  %v803_v8 = vmax.f32 %v2805_v25, %v802_v49 }
 0x16c   : > { %v2894_v55 = vsel %vm823_vm4, %v742_v40, %v1371_v7  ;;  %v777_v38 = vrot.slane %v776_v53, 1  ;;  %v1461_v10 = vsel %vm821_vm3, %v769_v30, %v1460_v31  ;;  %v811_v44 = vrot.slane %v810_v50, 2  ;;  %p2171_p2 = por %p2170_p1, %p2169_p0 }
 0x16d   : > { %v796_v2 = vmax.f32 %v794_v18, %v795_v36  ;;  %v804_v47 = vrot.slane %v803_v8, 1 }
 0x16e   : > { %v778_v56 = vmax.f32 %v776_v53, %v777_v38  ;;  %v812_v45 = vmax.f32 %v810_v50, %v811_v44  ;;  %p2172_p3 = pnand %p2171_p2, %p2165_p13 }
 0x16f   : > { %v805_v48 = vmax.f32 %v803_v8, %v804_v47  ;;  %v1550_v62 = vsel %vm819_vm2, %v796_v2, %v787_v0 }
 0x170   : > { %v2900_v11 = vsel %vm823_vm4, %v778_v56, %v1461_v10  ;;  %v813_v63 = vrot.slane %v812_v45, 1 }
 0x171   : > { %v1551_v6 = vsel %vm821_vm3, %v805_v48, %v1550_v62 }
 0x172   : > { %v814_v3 = vmax.f32 %v812_v45, %v813_v63 }
 0x174   : > { %v2904_v25 = vsel %vm823_vm4, %v814_v3, %v1551_v6 }
 0x1b8   : > { %v826_v19 = vpop.permute.xlu0 %825 }
 0x1b9   : > { %1963 = vmatprep.subr.msk.mxu1 %vm670_vm0, %v826_v19 }
 0x1ba   : > { %1964 = vmatpush3.xpose.msk.msra.mxu1 %vm670_vm0, %v826_v19 }
 0x1bd   : > { %1966 = vmatmul.mubr.msk.f32.vlgmr.msra.gmra.mrb[0].mxu1 %vm670_vm0, %v3121_v34 }
 0x1be   : > { %1970 = vmatprep.mubr.msk.f32.mxu1 %vm670_vm0, %v3122_v20 }
 0x1c9   : > { %v918_v39 = vpop.permute.xlu1 %917 }
 0x1ca   : > { %1968 = vmatprep.subr.msk.mxu1 %vm670_vm0, %v918_v39 }
 0x1cb   : > { %1969 = vmatpush3.xpose.msk.msra.mxu1 %vm670_vm0, %v918_v39 }
 0x1cc   : > { %v1010_v57 = vpop.permute.xlu0 %1009 }
 0x1cd   : > { %1973 = vmatprep.subr.msk.mxu1 %vm670_vm0, %v1010_v57 }
 0x1ce   : > { %1971 = vmatmul.mubr.msk.f32.vlgmr.msra.gmra.mrb[2].mxu1 %vm670_vm0, %v3123_v43 }
 0x1cf   : > { %1975 = vmatprep.mubr.msk.f32.mxu1 %vm670_vm0, %v3124_v35  ;;  %1974 = vmatpush3.xpose.msk.msra.mxu1 %vm670_vm0, %v1010_v57 }
 0x1d2   : > { %1976 = vmatmul.mubr.msk.f32.vlgmr.msra.gmra.mrb[4].mxu1 %vm670_vm0, %v3125_v41 }
 0x1d3   : > { %1980 = vmatprep.mubr.msk.f32.mxu1 %vm670_vm0, %v2705_v21 }
 0x1da   : > { %v1102_v12 = vpop.permute.xlu1 %1101 }
 0x1db   : > { %1978 = vmatprep.subr.msk.mxu1 %vm670_vm0, %v1102_v12 }
 0x1dc   : > { %1979 = vmatpush3.xpose.msk.msra.mxu1 %vm670_vm0, %v1102_v12 }
 0x1dd   : > { %1983 = vmatprep.subr.msk.mxu1 %vm1288_vm5, %v2873_v4 }
 0x1df   : > { %1981 = vmatmul.mubr.msk.f32.vlgmr.msra.gmra.mrb[6].mxu1 %vm670_vm0, %v2755_v61 }
 0x1e0   : > { %1984 = vmatpush3.msk.msra.mxu1 %vm1288_vm5, %v2873_v4 }
 0x1e1   : > { %1988 = vmatprep.subr.msk.mxu1 %vm1288_vm5, %v2894_v55 }
 0x290   : > { %v1967_v21 = vpop.f32.mrb[0].mxu1 }
 0x291   : > { %v901_v59 = vpop.f32.mrb[1].mxu1  ;;  %v1190_v27 = vsel %vm1186_vm6, %v1967_v21, -inf }
 0x292   : > { %1191 = vmax.xlane.f32.xlu1 %v1190_v27  ;;  %v1187_v58 = vsel %vm1186_vm6, %v901_v59, -inf }
 0x293   : > { %1188 = vmax.xlane.f32.xlu0 %v1187_v58 }
 0x2a1   : > { %v1972_v22 = vpop.f32.mrb[2].mxu1 }
 0x2a2   : > { %v993_v26 = vpop.f32.mrb[3].mxu1  ;;  %v1196_v33 = vsel %vm1186_vm6, %v1972_v22, -inf }
 0x2a3   : > { %v1193_v51 = vsel %vm1186_vm6, %v993_v26, -inf }
 0x2a4   : > { %1194 = vmax.xlane.f32.xlu0 %v1193_v51 }
 0x2a5   : > { %v1977_v61 = vpop.f32.mrb[4].mxu1 }
 0x2a6   : > { %v1085_v52 = vpop.f32.mrb[5].mxu1  ;;  %v1202_v54 = vsel %vm1186_vm6, %v1977_v61, -inf }
 0x2a7   : > { %v1199_v4 = vsel %vm1186_vm6, %v1085_v52, -inf }
 0x2a8   : > { %1197 = vmax.xlane.f32.xlu0 %v1196_v33  ;;  %1200 = vmax.xlane.f32.xlu1 %v1199_v4 }
 0x2ac   : > { %1203 = vmax.xlane.f32.xlu0 %v1202_v54 }
 0x2b2   : > { %v1982_v23 = vpop.f32.mrb[6].mxu1 }
 0x2b3   : > { %v1177_v24 = vpop.f32.mrb[7].mxu1  ;;  %v1208_v16 = vsel %vm1186_vm6, %v1982_v23, -inf }
 0x2b4   : > { %1209 = vmax.xlane.f32.xlu0 %v1208_v16  ;;  %v1205_v46 = vsel %vm1186_vm6, %v1177_v24, -inf }
 0x2b5   : > { %1206 = vmax.xlane.f32.xlu1 %v1205_v46 }
 0x31f   : > { %v1192_v60 = vpop.xlane.xlu1 %1191 }
 0x320   : > { %v1212_v32 = vsub.f32 %v1967_v21, %v1192_v60  ;;  %v1189_v42 = vpop.xlane.xlu0 %1188 }
 0x321   : > { %v1211_v13 = vsub.f32 %v901_v59, %v1189_v42  ;;  %v1638_v42 = vld [vmem:[%s3080_s4 + $0x10] sm:$0xff] }
 0x322   : > { %v1221_v5 = vmul.f32 1.442695, %v1212_v32 }
 0x323   : > { %v1219_v15 = vmul.f32 1.442695, %v1211_v13 }
 0x324   : > { %2122 = vpow2.f32 %v1221_v5 }
 0x325   : > { %2124 = vpow2.f32 %v1219_v15 }
 0x32e   : > { %v2123_v37 = vpop.eup %2122 }
 0x32f   : > { %v2125_v17 = vpop.eup %2124  ;;  %v1238_v29 = vsel %vm1186_vm6, %v2123_v37, 0.0 }
 0x330   : > { %1239 = vadd.xlane.f32.xlu0 %v1238_v29  ;;  %v1235_v28 = vsel %vm1186_vm6, %v2125_v17, 0.0 }
 0x331   : > { %v1195_v7 = vpop.xlane.xlu0 %1194  ;;  %1236 = vadd.xlane.f32.xlu1 %v1235_v28  ;;  %v1642_v28 = vld [vmem:[%s3080_s4 + $0x30] sm:$0xff] }
 0x332   : > { %v1213_v9 = vsub.f32 %v993_v26, %v1195_v7  ;;  %v1643_v7 = vld [vmem:[%s3080_s4 + $0x38] sm:$0xff] }
 0x334   : > { %v1223_v14 = vmul.f32 1.442695, %v1213_v9  ;;  %v2075_v9 = vpack.c.bf16 %v1643_v7, %v1642_v28 }
 0x335   : > { %v1198_v1 = vpop.xlane.xlu0 %1197  ;;  %v1201_v40 = vpop.xlane.xlu1 %1200 }
 0x336   : > { %2126 = vpow2.f32 %v1223_v14  ;;  %v1214_v31 = vsub.f32 %v1972_v22, %v1198_v1  ;;  %v1215_v18 = vsub.f32 %v1085_v52, %v1201_v40 }
 0x338   : > { %v1225_v49 = vmul.f32 1.442695, %v1214_v31  ;;  %v1227_v30 = vmul.f32 1.442695, %v1215_v18 }
 0x339   : > { %v1204_v53 = vpop.xlane.xlu0 %1203 }
 0x33a   : > { %2128 = vpow2.f32 %v1225_v49  ;;  %v1216_v50 = vsub.f32 %v1977_v61, %v1204_v53 }
 0x33b   : > { %2130 = vpow2.f32 %v1227_v30 }
 0x33c   : > { %v1229_v0 = vmul.f32 1.442695, %v1216_v50  ;;  %v1905_v50 = vld [vmem:[%s3081_s5] ss:$0 sm:$0xff] }
 0x33e   : > { %2132 = vpow2.f32 %v1229_v0 }
 0x340   : > { %v2127_v36 = vpop.eup %2126 }
 0x341   : > { %v1210_v8 = vpop.xlane.xlu0 %1209  ;;  %v1241_v44 = vsel %vm1186_vm6, %v2127_v36, 0.0 }
 0x342   : > { %v1218_v38 = vsub.f32 %v1982_v23, %v1210_v8  ;;  %v1207_v10 = vpop.xlane.xlu1 %1206  ;;  %1242 = vadd.xlane.f32.xlu1 %v1241_v44  ;;  %v1636_v23 = vld [vmem:[%s3080_s4] sm:$0xff] }
 0x343   : > { %v1217_v2 = vsub.f32 %v1177_v24, %v1207_v10  ;;  %v1637_v24 = vld [vmem:[%s3080_s4 + $0x8] sm:$0xff] }
 0x344   : > { %v1233_v47 = vmul.f32 1.442695, %v1218_v38  ;;  %v2129_v56 = vpop.eup %2128  ;;  %v2063_v60 = vpack.c.bf16 %v1637_v24, %v1636_v23  ;;  %v2154_v10 = vld [vmem:[%s2471_s29 + $0x8] sm:$0xff] }
 0x345   : > { %v1231_v45 = vmul.f32 1.442695, %v1217_v2  ;;  %v2131_v48 = vpop.eup %2130  ;;  %v1244_v62 = vsel %vm1186_vm6, %v2129_v56, 0.0  ;;  %v2155_v2 = vld [vmem:[%s2471_s29] sm:$0xff] }
 0x346   : > { %2134 = vpow2.f32 %v1233_v47  ;;  %1245 = vadd.xlane.f32.xlu0 %v1244_v62  ;;  %v1247_v63 = vsel %vm1186_vm6, %v2131_v48, 0.0 }
 0x347   : > { %2136 = vpow2.f32 %v1231_v45  ;;  %1248 = vadd.xlane.f32.xlu1 %v1247_v63  ;;  %v2156_v63 = vld [vmem:[%s2471_s29 + $0x18] sm:$0xff] }
 0x348   : > { %v2133_v6 = vpop.eup %2132 }
 0x349   : > { %v1250_v3 = vsel %vm1186_vm6, %v2133_v6, 0.0 }
 0x34a   : > { %1251 = vadd.xlane.f32.xlu0 %v1250_v3  ;;  %v2157_v3 = vld [vmem:[%s2471_s29 + $0x10] sm:$0xff] }
 0x350   : > { %v2135_v19 = vpop.eup %2134 }
 0x351   : > { %v2137_v34 = vpop.eup %2136  ;;  %v1256_v20 = vsel %vm1186_vm6, %v2135_v19, 0.0 }
 0x352   : > { %1257 = vadd.xlane.f32.xlu0 %v1256_v20  ;;  %v1253_v39 = vsel %vm1186_vm6, %v2137_v34, 0.0 }
 0x353   : > { %1254 = vadd.xlane.f32.xlu1 %v1253_v39 }
 0x3bd   : > { %v1240_v57 = vpop.xlane.xlu0 %1239 }
 0x3be   : > { %2138 = vrcp.f32 %v1240_v57  ;;  %v1237_v43 = vpop.xlane.xlu1 %1236 }
 0x3bf   : > { %2140 = vrcp.f32 %v1237_v43  ;;  %v2158_v43 = vld [vmem:[%s2471_s29 + $0x28] sm:$0xff] }
 0x3c8   : > { %v2139_v35 = vpop.eup %2138 }
 0x3c9   : > { %v2141_v41 = vpop.eup %2140  ;;  %v1262_v21 = vmul.f32 %v2139_v35, %v2123_v37 }
 0x3ca   : > { %v1260_v12 = vmul.f32 %v2141_v41, %v2125_v17  ;;  %v1641_v17 = vld [vmem:[%s3080_s4 + $0x28] sm:$0xff]  ;;  %v2159_v41 = vld [vmem:[%s2471_s29 + $0x20] sm:$0xff] }
 0x3cc   : > { %1985 = vmatprep.mubr.msk.f32.mxu1 %vm1186_vm6, %v1260_v12 }
 0x3cd   : > { %1986 = vmatmul.mubr.msk.f32.vlgmr.msra.gmra.mrb[8].mxu1 %vm1186_vm6, %v1262_v21 }
 0x3ce   : > { %1989 = vmatpush3.msk.msra.mxu1 %vm1288_vm5, %v2894_v55 }
 0x3cf   : > { %v1243_v59 = vpop.xlane.xlu1 %1242  ;;  %1993 = vmatprep.subr.msk.mxu1 %vm1288_vm5, %v2900_v11 }
 0x3d0   : > { %2142 = vrcp.f32 %v1243_v59 }
 0x3d3   : > { %v1246_v27 = vpop.xlane.xlu0 %1245 }
 0x3d4   : > { %2144 = vrcp.f32 %v1246_v27  ;;  %v1249_v58 = vpop.xlane.xlu1 %1248 }
 0x3d5   : > { %2146 = vrcp.f32 %v1249_v58 }
 0x3d7   : > { %v1252_v22 = vpop.xlane.xlu0 %1251 }
 0x3d8   : > { %2148 = vrcp.f32 %v1252_v22  ;;  %v2160_v22 = vld [vmem:[%s2471_s29 + $0x38] sm:$0xff] }
 0x3da   : > { %v2143_v26 = vpop.eup %2142 }
 0x3db   : > { %v1264_v51 = vmul.f32 %v2143_v26, %v2127_v36 }
 0x3dd   : > { %1990 = vmatprep.mubr.msk.f32.mxu1 %vm1186_vm6, %v1264_v51  ;;  %v2161_v51 = vld [vmem:[%s2471_s29 + $0x30] sm:$0xff] }
 0x3de   : > { %v2145_v61 = vpop.eup %2144 }
 0x3df   : > { %v1258_v52 = vpop.xlane.xlu0 %1257  ;;  %v2147_v33 = vpop.eup %2146  ;;  %v1266_v4 = vmul.f32 %v2145_v61, %v2129_v56 }
 0x3e0   : > { %2150 = vrcp.f32 %v1258_v52  ;;  %v1255_v55 = vpop.xlane.xlu1 %1254  ;;  %v1268_v54 = vmul.f32 %v2147_v33, %v2131_v48 }
 0x3e1   : > { %2152 = vrcp.f32 %v1255_v55  ;;  %1991 = vmatmul.mubr.msk.f32.vlgmr.msra.gmra.mrb[10].mxu1 %vm1186_vm6, %v1266_v4 }
 0x3e2   : > { %v2149_v16 = vpop.eup %2148  ;;  %1994 = vmatpush3.msk.msra.mxu1 %vm1288_vm5, %v2900_v11  ;;  %1995 = vmatprep.mubr.msk.f32.mxu1 %vm1186_vm6, %v1268_v54  ;;  %v1639_v11 = vld [vmem:[%s3080_s4 + $0x18] sm:$0xff] }
 0x3e3   : > { %v1270_v46 = vmul.f32 %v2149_v16, %v2133_v6  ;;  %1998 = vmatprep.subr.msk.mxu1 %vm1288_vm5, %v2904_v25  ;;  %v2067_v37 = vpack.c.bf16 %v1639_v11, %v1638_v42 }
 0x3e5   : > { %1996 = vmatmul.mubr.msk.f32.vlgmr.msra.gmra.mrb[12].mxu1 %vm1186_vm6, %v1270_v46 }
 0x3e6   : > { %1999 = vmatpush3.msk.msra.mxu1 %vm1288_vm5, %v2904_v25  ;;  %v1640_v25 = vld [vmem:[%s3080_s4 + $0x20] sm:$0xff] }
 0x3e7   : > { %2064 = vmatprep.subr.bf16.mxu1 %v2063_v60  ;;  %v2071_v29 = vpack.c.bf16 %v1641_v17, %v1640_v25 }
 0x3ea   : > { %v2151_v32 = vpop.eup %2150 }
 0x3eb   : > { %v2153_v13 = vpop.eup %2152  ;;  %v1274_v15 = vmul.f32 %v2151_v32, %v2135_v19 }
 0x3ec   : > { %v1272_v5 = vmul.f32 %v2153_v13, %v2137_v34 }
 0x3ee   : > { %2000 = vmatprep.mubr.msk.f32.mxu1 %vm1186_vm6, %v1272_v5 }
 0x3ef   : > { %2001 = vmatmul.mubr.msk.f32.vlgmr.msra.gmra.mrb[14].mxu1 %vm1186_vm6, %v1274_v15 }
 0x3f0   : > { %2066 = vmatpush3.bf16.msra.mxu1 %v2063_v60 }
 0x3f1   : > { %2068 = vmatprep.subr.bf16.mxu1 %v2067_v37 }
 0x3f4   : > { %2070 = vmatpush3.bf16.msra.mxu1 %v2067_v37 }
 0x3f5   : > { %2072 = vmatprep.subr.bf16.mxu1 %v2071_v29 }
 0x3f8   : > { %2074 = vmatpush3.bf16.msra.mxu1 %v2071_v29 }
 0x3f9   : > { %2076 = vmatprep.subr.bf16.mxu1 %v2075_v9 }
 0x3fc   : > { %2078 = vmatpush3.bf16.msra.mxu1 %v2075_v9 }
 0x4a0   : > { %v1987_v14 = vpop.f32.mrb[8].mxu1 }
 0x4a1   : > { %v1357_v1 = vpop.f32.mrb[9].mxu1 }
 0x4a2   : > { %2019 = vmatprep.mubr.msk.f32.mxu1 %vm670_vm0, %v1357_v1 }
 0x4a3   : > { %2020 = vmatmul.mubr.msk.f32.vlgmr.msra.gmra.mrb[16].mxu1 %vm670_vm0, %v1987_v14 }
 0x4b4   : > { %v1992_v40 = vpop.f32.mrb[10].mxu1 }
 0x4b5   : > { %v1447_v31 = vpop.f32.mrb[11].mxu1 }
 0x4b6   : > { %2022 = vmatprep.mubr.msk.f32.mxu1 %vm670_vm0, %v1447_v31 }
 0x4b7   : > { %2023 = vmatmul.mubr.msk.f32.gmra.mrb[18].mxu1 %vm670_vm0, %v1992_v40 }
 0x4b8   : > { %v1997_v18 = vpop.f32.mrb[12].mxu1 }
 0x4b9   : > { %v1537_v49 = vpop.f32.mrb[13].mxu1 }
 0x4ba   : > { %2025 = vmatprep.mubr.msk.f32.mxu1 %vm670_vm0, %v1537_v49 }
 0x4bb   : > { %2026 = vmatmul.mubr.msk.f32.gmra.mrb[20].mxu1 %vm670_vm0, %v1997_v18 }
 0x4c2   : > { %v2002_v30 = vpop.f32.mrb[14].mxu1 }
 0x4c3   : > { %v1627_v53 = vpop.f32.mrb[15].mxu1 }
 0x4c4   : > { %2028 = vmatprep.mubr.msk.f32.mxu1 %vm670_vm0, %v1627_v53 }
 0x4c5   : > { %2029 = vmatmul.mubr.msk.f32.gmra.mrb[22].mxu1 %vm670_vm0, %v2002_v30 }
 0x576   : > { %v2021_v0 = vpop.f32.mrb[16].mxu1 }
 0x577   : > { %v1747_v36 = vadd.f32 %v2021_v0, %v1905_v50  ;;  %v1741_v8 = vpop.f32.mrb[17].mxu1 }
 0x578   : > { %v1742_v38 = vadd.f32 %v1905_v50, %v1741_v8 }
 0x579   : > { %v1781_v44 = vadd.f32 %v2154_v10, %v1747_v36 }
 0x57a   : > { %v1780_v47 = vadd.f32 %v2155_v2, %v1742_v38 }
 0x57b   : > { %1789 = vst [vmem:[%s3008_s17 + $0x8] sm:$0xff] %v1781_v44 }
 0x57c   : > { %1788 = vst [vmem:[%s3008_s17] sm:$0xff] %v1780_v47 }
 0x58a   : > { %v2024_v56 = vpop.f32.mrb[18].mxu1 }
 0x58b   : > { %v1757_v45 = vadd.f32 %v2024_v56, %v1905_v50  ;;  %v1751_v48 = vpop.f32.mrb[19].mxu1 }
 0x58c   : > { %v1752_v62 = vadd.f32 %v1905_v50, %v1751_v48 }
 0x58d   : > { %v1783_v6 = vadd.f32 %v2156_v63, %v1757_v45 }
 0x58e   : > { %v1782_v19 = vadd.f32 %v2157_v3, %v1752_v62  ;;  %v2027_v34 = vpop.f32.mrb[20].mxu1 }
 0x58f   : > { %1791 = vst [vmem:[%s3008_s17 + $0x18] sm:$0xff] %v1783_v6  ;;  %v1767_v20 = vadd.f32 %v2027_v34, %v1905_v50  ;;  %v1761_v39 = vpop.f32.mrb[21].mxu1 }
 0x590   : > { %1790 = vst [vmem:[%s3008_s17 + $0x10] sm:$0xff] %v1782_v19  ;;  %v1762_v57 = vadd.f32 %v1905_v50, %v1761_v39 }
 0x591   : > { %v1785_v35 = vadd.f32 %v2158_v43, %v1767_v20 }
 0x592   : > { %v1784_v12 = vadd.f32 %v2159_v41, %v1762_v57 }
 0x593   : > { %1793 = vst [vmem:[%s3008_s17 + $0x28] sm:$0xff] %v1785_v35 }
 0x594   : > { %1792 = vst [vmem:[%s3008_s17 + $0x20] sm:$0xff] %v1784_v12 }
 0x598   : > { %v2030_v21 = vpop.f32.mrb[22].mxu1 }
 0x599   : > { %v1777_v59 = vadd.f32 %v2030_v21, %v1905_v50  ;;  %v1771_v27 = vpop.f32.mrb[23].mxu1 }
 0x59a   : > { %v1772_v58 = vadd.f32 %v1905_v50, %v1771_v27 }
 0x59b   : > { %v1787_v26 = vadd.f32 %v2160_v22, %v1777_v59 }
 0x59c   : > { %v1786_v61 = vadd.f32 %v2161_v51, %v1772_v58 }
 0x59d   : > { %1795 = vst [vmem:[%s3008_s17 + $0x38] sm:$0xff] %v1787_v26 }
 0x59e   : > { %1794 = vst [vmem:[%s3008_s17 + $0x30] sm:$0xff] %v1786_v61 }
 0x59f   : > { %2175 = shalt.err (!%p2172_p3)
}
 0x5a0   : > { %s2176_s29 = scalar_lea.hbm %s3026_s28, 1024  ;;  %s2180_s15 = scalar_lea.hbm %s3082_s6, 2048 }
 0x5a1   : > { %p2177_p4 = scmp.ne.s32.totalorder %s3026_s28, %s2176_s29  ;;  %p2181_p9 = scmp.lt.u32.totalorder %s3026_s28, %s3082_s6 }
 0x5a2   : > { %p2182_p10 = scmp.lt.u32.totalorder %s2180_s15, %s2176_s29  ;;  %p2184_p12 = scmp.lt.u32.totalorder %s2176_s29, %s3026_s28 }
 0x5a3   : > { %p2178_p7 = pnand %p2177_p4, %p2304_p5 }
 0x5a4   : > { %p2183_p11 = por %p2182_p10, %p2181_p9 }
 0x5a5   : > { %p2179_p8 = pneg %p2178_p7 }
 0x5a6   : > { %p2185_p13 = por %p2184_p12, %p2183_p11 }
 0x5a8   : > { %p2186_p0 = pnand %p2185_p13, %p2179_p8 }
 0x5aa   : > { %2189 = shalt.err (!%p2186_p0)
}
 0x5ab   : > { %s2229_s18 = smov 128   ;;  %s2230_s20 = smov 8  }
 0x5ac   : > { %2079 = dma.vmem_to_hbm [thread:$0]  (%p2304_p5), %s3028_s19, 1024, %s3026_s28, %s3035_s25, %s2229_s18, %s2229_s18, %s2230_s20  }
 0x5ad PF: > { %p2085_p1 = scmp.ge.s32.totalorder %s2224_s24, 2  ;;  %s1826_s26 = sand.u32 1, %s2212_s21  }
 0x5ae   : > { %s1827_s13 = scalar_lea.sflag [#allocation3], %s1826_s26 }
 0x5af   : > { %p2082_p2 = pnand %p2085_p1, %p2308_p6 }
 0x5b1   : > { %2207 = dma.done.wait (!%p2082_p2), %s1827_s13, 1024  }
 0x5b2   : > { %2209 = vsyncadd (!%p2082_p2), %s1827_s13, 4294966272  ;;  %p16_p3 = scmp.ge.s32.totalorder %s2291_s27, 4   ;;  %s3126_s21 = smov %s2216_s22 }
 0x5b3   : > { %s3127_s22 = smov %s2220_s23  ;;  %s3128_s23 = smov %s2302_s30 }
 0x5b4   : > { %s3129_s24 = smov %s2291_s27  ;;  %18 = sbr.rel (!%p16_p3) target bundleno = 3 (0x3), region = 79 }
 0x5bb   :  { %1832 = vsyncpa [#allocation3], 1 }
 0x5bc   :  { %1834 = vsyncpa [#allocation3 + $0x1], 1 }

</bundles_post_ra>
